<compile_context>
chip_gen: v5e
topology: v5e:2x2
jax: 0.10.0
libtpu: 0.0.40
codegen_flags: <defaults>
</compile_context>

<pallas_src>
import math
from functools import partial

import jax
import jax.numpy as jnp
from jax.experimental import pallas as pl
from jax.experimental.pallas import tpu as pltpu

LN_EPS = 1e-5  # PyTorch nn.LayerNorm default eps


def _ceil8(x):
    return (x + 7) // 8 * 8


def _layernorm(x, gamma, beta):
    # One-pass stats: var = E[x^2] - mean^2 (single cross-lane reduction pair).
    inv_n = 1.0 / x.shape[-1]
    mu = jnp.sum(x, axis=-1, keepdims=True) * inv_n
    ms = jnp.sum(x * x, axis=-1, keepdims=True) * inv_n
    var = ms - mu * mu
    return (x - mu) * jax.lax.rsqrt(var + LN_EPS) * gamma + beta


def _read_sab(slab_ref, layout, dv):
    """Slice one SAB's parameters out of the packed (rows, 3*dv) slab (static offsets)."""
    off, din, dpad = layout
    wqkv = slab_ref[off:off + din, :]                  # (din, 3*dv); K columns pre-scaled
    wo_r = off + dpad
    wo = slab_ref[wo_r:wo_r + dv, 0:dv]                # (dv, dv)
    vb = wo_r + dv
    bqkv = slab_ref[vb:vb + 1, :]                      # (1, 3*dv)
    bo = slab_ref[vb + 1:vb + 2, 0:dv]
    g0 = slab_ref[vb + 2:vb + 3, 0:dv]
    b0 = slab_ref[vb + 3:vb + 4, 0:dv]
    g1 = slab_ref[vb + 4:vb + 5, 0:dv]
    b1 = slab_ref[vb + 5:vb + 6, 0:dv]
    return wqkv, bqkv, wo, bo, g0, b0, g1, b1


def _sab_batched(x, prm, num_heads, tb, n, o_scr):
    """One SAB over TB independent sets flattened to (tb*n, din) rows -> (tb*n, dv)."""
    wqkv, bqkv, wo, bo, g0, b0, g1, b1 = prm
    dv = wo.shape[1]
    dh = dv // num_heads

    # Fused QKV projection over all TB*N rows: one MXU pass on the (din, 3*dv) weight.
    qkv = jnp.dot(x, wqkv, preferred_element_type=jnp.float32) + bqkv    # (tb*n, 3*dv)

    # Per-head attention, batched over the TB sets (dot_general with a batch dim; no
    # explicit kh.T). Heads land at lane offsets of a VMEM scratch (no concatenate).
    for h in range(num_heads):
        qh = qkv[:, h * dh:(h + 1) * dh].reshape(tb, n, dh)
        kh = qkv[:, dv + h * dh:dv + (h + 1) * dh].reshape(tb, n, dh)
        vh = qkv[:, 2 * dv + h * dh:2 * dv + (h + 1) * dh].reshape(tb, n, dh)
        s = jnp.einsum("bnd,bmd->bnm", qh, kh, preferred_element_type=jnp.float32)
        s = s - jnp.max(s, axis=-1, keepdims=True)
        p = jnp.exp(s)
        # EUP approximate reciprocal: softmax divide comes off the VPU critical path.
        p = p * pl.reciprocal(jnp.sum(p, axis=-1, keepdims=True), approx=True)
        oh = qh + jnp.einsum("bnm,bmd->bnd", p, vh, preferred_element_type=jnp.float32)
        o_scr[:, h * dh:(h + 1) * dh] = oh.reshape(tb * n, dh)

    o = o_scr[...]                                                        # (tb*n, dv)
    o = _layernorm(o, g0, b0)                                             # ln0
    o = o + jnp.maximum(jnp.dot(o, wo, preferred_element_type=jnp.float32) + bo, 0.0)
    o = _layernorm(o, g1, b1)                                             # ln1
    return o


def _sab_setsize1(x, prm):
    """Decoder SAB: the set has exactly one element (it follows sum(dim=1, keepdim=True)),
    so softmax over the length-1 key axis is exactly 1 and attention output = Q + V."""
    wqkv, bqkv, wo, bo, g0, b0, g1, b1 = prm
    dv = wo.shape[1]
    qkv = jnp.dot(x, wqkv, preferred_element_type=jnp.float32) + bqkv     # (tb, 3*dv)
    o = qkv[:, 0:dv] + qkv[:, 2 * dv:3 * dv]                              # Q + A@V, A == 1
    o = _layernorm(o, g0, b0)
    o = o + jnp.maximum(jnp.dot(o, wo, preferred_element_type=jnp.float32) + bo, 0.0)
    o = _layernorm(o, g1, b1)
    return o


def _deepset_kernel(x_ref, slab_ref, head_ref, out_ref, o_scr, *,
                    num_heads, layouts, set_size, dim_hidden, dim_input):
    tb = x_ref.shape[0]
    n = set_size
    dv = dim_hidden

    x = x_ref[...].reshape(tb * n, dim_input).astype(jnp.float32)     # (tb*n, din)

    h = _sab_batched(x, _read_sab(slab_ref, layouts[0], dv), num_heads, tb, n, o_scr)
    h = _sab_batched(h, _read_sab(slab_ref, layouts[1], dv), num_heads, tb, n, o_scr)

    # set-sum: v.sum(dim=1, keepdim=True), batched over the TB sets (static unroll).
    h3 = h.reshape(tb, n, dv)
    s = h3[:, 0, :]
    for i in range(1, n):
        s = s + h3[:, i, :]                                            # (tb, dv)

    s = _sab_setsize1(s, _read_sab(slab_ref, layouts[2], dv))           # (tb, dv)

    wd = head_ref[0:dv, :]
    bd = head_ref[dv:dv + 1, :]
    y = jnp.dot(s, wd, preferred_element_type=jnp.float32) + bd         # (tb, dout)
    out_ref[0] = y.astype(out_ref.dtype)


# ----------------------------- parameter packing & wrapper ----------------------------- #

def _pack_sab_slab(params, dim_input, dim_hidden):
    """Pack the 3 SAB blocks (24 tensors) into one (rows, 3*dim_hidden) f32 slab.
    The 1/sqrt(dim_hidden) attention-score scale is folded into the K columns of
    wqkv/bqkv here (Q stays raw because the residual uses raw Q)."""
    dv = dim_hidden
    w3 = 3 * dv
    inv_scale = 1.0 / math.sqrt(dv)
    blocks, layouts, row = [], [], 0
    for name, din in (("enc0", dim_input), ("enc1", dv), ("dec0", dv)):
        p = params[name]
        dpad = _ceil8(din)
        rows = dpad + dv + 8
        wqkv = p["wqkv"].astype(jnp.float32).at[:, dv:2 * dv].multiply(inv_scale)
        bqkv = p["bqkv"][0].astype(jnp.float32).at[dv:2 * dv].multiply(inv_scale)
        blk = jnp.zeros((rows, w3), jnp.float32)
        blk = blk.at[0:din, :].set(wqkv)
        blk = blk.at[dpad:dpad + dv, 0:dv].set(p["wo"])
        vb = dpad + dv
        blk = blk.at[vb, :].set(bqkv)
        blk = blk.at[vb + 1, 0:dv].set(p["bo"][0])
        blk = blk.at[vb + 2, 0:dv].set(p["g0"][0])
        blk = blk.at[vb + 3, 0:dv].set(p["b0"][0])
        blk = blk.at[vb + 4, 0:dv].set(p["g1"][0])
        blk = blk.at[vb + 5, 0:dv].set(p["b1"][0])
        blocks.append(blk)
        layouts.append((row, din, dpad))
        row += rows
    return jnp.concatenate(blocks, axis=0), tuple(layouts)


def _pack_head_slab(params, dim_hidden):
    dv = dim_hidden
    dout = params["wd"].shape[1]
    slab = jnp.zeros((_ceil8(dv + 1), dout), jnp.float32)
    slab = slab.at[0:dv, :].set(params["wd"])
    slab = slab.at[dv, :].set(params["bd"][0])
    return slab


def _choose_batch_tile(batch, set_size):
    """TB sets per grid step: target TB*N ~ 256 MXU rows, but keep grid length >= 2 so
    the 'parallel' batch axis can split across v7x's two TensorCores."""
    tb = max(1, 256 // max(set_size, 1))
    if batch >= 2:
        tb = min(tb, batch // 2)
    else:
        tb = 1
    return max(tb, 1)


def deepset_attention_values(obs, params, num_heads, batch_tile=None):
    """Fused enc(obs) -> set-sum -> dec -> (B, dim_output) in a single pallas_call."""
    B, N, Din = obs.shape
    Dv = params["enc1"]["wo"].shape[0]
    dout = params["wd"].shape[1]

    tb = batch_tile if batch_tile is not None else _choose_batch_tile(B, N)
    n_steps = pl.cdiv(B, tb)
    b_pad = n_steps * tb
    if b_pad != B:
        obs = jnp.concatenate([obs, jnp.zeros((b_pad - B, N, Din), obs.dtype)], axis=0)

    slab, layouts = _pack_sab_slab(params, Din, Dv)
    head_slab = _pack_head_slab(params, Dv)

    kernel = partial(_deepset_kernel, num_heads=num_heads, layouts=layouts,
                     set_size=N, dim_hidden=Dv, dim_input=Din)

    out = pl.pallas_call(
        kernel,
        out_shape=jax.ShapeDtypeStruct((n_steps, tb, dout), obs.dtype),
        grid_spec=pltpu.PrefetchScalarGridSpec(
            num_scalar_prefetch=0,
            grid=(n_steps,),
            in_specs=[
                pl.BlockSpec((tb, N, Din), lambda b: (b, 0, 0)),
                pl.BlockSpec(slab.shape, lambda b: (0, 0)),        # constant-index weights
                pl.BlockSpec(head_slab.shape, lambda b: (0, 0)),
            ],
            out_specs=pl.BlockSpec((1, tb, dout), lambda b: (b, 0, 0)),
            scratch_shapes=[pltpu.VMEM((tb * N, Dv), jnp.float32)],
        ),
        compiler_params=pltpu.CompilerParams(dimension_semantics=("parallel",)),
    )(obs, slab, head_slab)
    return out.reshape(b_pad, dout)[:B]                              # (B, dim_output)


def deepset_attention_forward(obs, act, params, num_heads):
    """forward(obs, act): obs (B,N,dim_input) f32, act (B,1) int -> q (B,1)."""
    v = deepset_attention_values(obs, params, num_heads)             # (B, dim_output)
    # q = torch.gather(v, 1, act)  (tiny, data-dependent -> plain-JAX glue)
    return jnp.take_along_axis(v, act, axis=1)                       # (B, 1)


# ----------------------------- params & pure-JAX reference ----------------------------- #

def init_sab_params(key, dim_in, dim_v):
    ks = jax.random.split(key, 4)

    def lin(k, i, o):
        return 0.1 * jax.random.normal(k, (i, o), jnp.float32)

    return {
        "wqkv": jnp.concatenate(
            [lin(ks[0], dim_in, dim_v), lin(ks[1], dim_in, dim_v), lin(ks[2], dim_in, dim_v)],
            axis=1),
        "bqkv": jnp.zeros((1, 3 * dim_v), jnp.float32),
        "wo": lin(ks[3], dim_v, dim_v), "bo": jnp.zeros((1, dim_v), jnp.float32),
        "g0": jnp.ones((1, dim_v), jnp.float32), "b0": jnp.zeros((1, dim_v), jnp.float32),
        "g1": jnp.ones((1, dim_v), jnp.float32), "b1": jnp.zeros((1, dim_v), jnp.float32),
    }


def _sab_ref(x, p, num_heads):
    dv = p["wo"].shape[0]
    dh = dv // num_heads
    qkv = x @ p["wqkv"] + p["bqkv"][0]
    q, k, v = qkv[..., :dv], qkv[..., dv:2 * dv], qkv[..., 2 * dv:]
    outs = []
    for h in range(num_heads):
        qh = q[..., h * dh:(h + 1) * dh]
        kh = k[..., h * dh:(h + 1) * dh]
        vh = v[..., h * dh:(h + 1) * dh]
        s = jnp.einsum("bnd,bmd->bnm", qh, kh) / math.sqrt(dv)
        a = jax.nn.softmax(s, axis=-1)
        outs.append(qh + jnp.einsum("bnm,bmd->bnd", a, vh))
    o = jnp.concatenate(outs, axis=-1)

    def ln(t, g, b):
        mu = t.mean(-1, keepdims=True)
        var = ((t - mu) ** 2).mean(-1, keepdims=True)
        return (t - mu) / jnp.sqrt(var + LN_EPS) * g[0] + b[0]

    o = ln(o, p["g0"], p["b0"])
    o = o + jax.nn.relu(o @ p["wo"] + p["bo"][0])
    o = ln(o, p["g1"], p["b1"])
    return o


def _forward_ref(obs, act, params, num_heads):
    h = _sab_ref(obs, params["enc0"], num_heads)
    h = _sab_ref(h, params["enc1"], num_heads)
    v = jnp.sum(h, axis=1, keepdims=True)
    v = _sab_ref(v, params["dec0"], num_heads)
    v = (v @ params["wd"] + params["bd"][0])[:, 0, :]
    return jnp.take_along_axis(v, act, axis=1)


if __name__ == "__main__":
    B, N = 2, 8                        # batch, set size
    dim_input, dim_hidden = 4, 32
    num_heads, dim_output = 4, 12

    key = jax.random.PRNGKey(0)
    k_obs, k_act, k0, k1, k2, k3 = jax.random.split(key, 6)

    obs = jax.random.normal(k_obs, (B, N, dim_input), jnp.float32)
    act = jax.random.randint(k_act, (B, 1), 0, dim_output)

    params = {
        "enc0": init_sab_params(k0, dim_input, dim_hidden),
        "enc1": init_sab_params(k1, dim_hidden, dim_hidden),
        "dec0": init_sab_params(k2, dim_hidden, dim_hidden),
        "wd": 0.1 * jax.random.normal(k3, (dim_hidden, dim_output), jnp.float32),
        "bd": jnp.zeros((1, dim_output), jnp.float32),
    }

    fwd = jax.jit(partial(deepset_attention_forward, num_heads=num_heads))
    q = jax.block_until_ready(fwd(obs, act, params))
    assert q.shape == (B, 1), q.shape
    assert bool(jnp.all(jnp.isfinite(q)))

    q_ref = _forward_ref(obs, act, params, num_heads)
    assert bool(jnp.allclose(q, q_ref, rtol=5e-2, atol=5e-2)), (q, q_ref)

    print("KERNEL_OK")
</pallas_src>

<mosaic_0001>
module attributes {stable_mosaic.version = 11 : i64} {
  func.func @_deepset_kernel(%arg0: i32, %arg1: memref<1x8x4xf32, #tpu.memory_space<vmem>>, %arg2: memref<192x96xf32, #tpu.memory_space<vmem>>, %arg3: memref<40x12xf32, #tpu.memory_space<vmem>>, %arg4: memref<1x1x12xf32, #tpu.memory_space<vmem>>, %arg5: memref<8x32xf32, #tpu.memory_space<vmem>>) attributes {dimension_semantics = [#tpu.dimension_semantics<parallel>], iteration_bounds = array<i64: 2>, scalar_prefetch = 0 : i64, scratch_operands = 1 : i64, tpu.core_type = #tpu.core_type<tc>, window_params = [{transform_indices = @transform_0, window_bounds = array<i64: 1, 8, 4>}, {pipeline_mode = #tpu.pipeline_mode<synchronous>, transform_indices = @transform_1, window_bounds = array<i64: 192, 96>}, {pipeline_mode = #tpu.pipeline_mode<synchronous>, transform_indices = @transform_2, window_bounds = array<i64: 40, 12>}, {transform_indices = @transform_3, window_bounds = array<i64: 1, 1, 12>}]} {
    %c0 = arith.constant 0 : index
    %c0_0 = arith.constant 0 : index
    %c0_1 = arith.constant 0 : index
    %0 = vector.load %arg1[%c0, %c0_0, %c0_1] : memref<1x8x4xf32, #tpu.memory_space<vmem>>, vector<1x8x4xf32>
    %1 = vector.shape_cast %0 : vector<1x8x4xf32> to vector<8x4xf32>
    %c0_2 = arith.constant 0 : index
    %c0_3 = arith.constant 0 : index
    %2 = vector.load %arg2[%c0_2, %c0_3] : memref<192x96xf32, #tpu.memory_space<vmem>>, vector<4x96xf32>
    %c8 = arith.constant 8 : index
    %c0_4 = arith.constant 0 : index
    %3 = vector.load %arg2[%c8, %c0_4] : memref<192x96xf32, #tpu.memory_space<vmem>>, vector<32x32xf32>
    %c40 = arith.constant 40 : index
    %c0_5 = arith.constant 0 : index
    %4 = vector.load %arg2[%c40, %c0_5] : memref<192x96xf32, #tpu.memory_space<vmem>>, vector<1x96xf32>
    %c41 = arith.constant 41 : index
    %c0_6 = arith.constant 0 : index
    %5 = vector.load %arg2[%c41, %c0_6] : memref<192x96xf32, #tpu.memory_space<vmem>>, vector<1x32xf32>
    %c42 = arith.constant 42 : index
    %c0_7 = arith.constant 0 : index
    %6 = vector.load %arg2[%c42, %c0_7] : memref<192x96xf32, #tpu.memory_space<vmem>>, vector<1x32xf32>
    %c43 = arith.constant 43 : index
    %c0_8 = arith.constant 0 : index
    %7 = vector.load %arg2[%c43, %c0_8] : memref<192x96xf32, #tpu.memory_space<vmem>>, vector<1x32xf32>
    %c44 = arith.constant 44 : index
    %c0_9 = arith.constant 0 : index
    %8 = vector.load %arg2[%c44, %c0_9] : memref<192x96xf32, #tpu.memory_space<vmem>>, vector<1x32xf32>
    %c45 = arith.constant 45 : index
    %c0_10 = arith.constant 0 : index
    %9 = vector.load %arg2[%c45, %c0_10] : memref<192x96xf32, #tpu.memory_space<vmem>>, vector<1x32xf32>
    %cst = arith.constant dense<0.000000e+00> : vector<8x96xf32>
    %10 = tpu.matmul %1, %2, %cst {dimension_numbers = #tpu.dot_dimension_numbers<[1], [0], [0], [1], [0, 0, 1, 1], [], []>} : vector<8x4xf32>, vector<4x96xf32>, vector<8x96xf32> -> vector<8x96xf32>
    %11 = vector.broadcast %4 : vector<1x96xf32> to vector<8x96xf32>
    %12 = arith.addf %10, %11 : vector<8x96xf32>
    %13 = vector.extract_strided_slice %12 {offsets = [0, 0], sizes = [8, 8], strides = [1, 1]} : vector<8x96xf32> to vector<8x8xf32>
    %14 = vector.shape_cast %13 : vector<8x8xf32> to vector<1x8x8xf32>
    %15 = vector.extract_strided_slice %12 {offsets = [0, 32], sizes = [8, 8], strides = [1, 1]} : vector<8x96xf32> to vector<8x8xf32>
    %16 = vector.shape_cast %15 : vector<8x8xf32> to vector<1x8x8xf32>
    %17 = vector.extract_strided_slice %12 {offsets = [0, 64], sizes = [8, 8], strides = [1, 1]} : vector<8x96xf32> to vector<8x8xf32>
    %18 = vector.shape_cast %17 : vector<8x8xf32> to vector<1x8x8xf32>
    "tpu.trace_start"() <{level = 10 : i32, message = "bnd,bmd->bnm"}> : () -> ()
    %cst_11 = arith.constant dense<0.000000e+00> : vector<1x8x8xf32>
    %19 = tpu.matmul %14, %16, %cst_11 {dimension_numbers = #tpu.dot_dimension_numbers<[2], [2], [1], [1], [0, 0, 0, 1, 1, 1], [0], [0]>} : vector<1x8x8xf32>, vector<1x8x8xf32>, vector<1x8x8xf32> -> vector<1x8x8xf32>
    "tpu.trace_stop"() : () -> ()
    %cst_12 = arith.constant dense<0xFF800000> : vector<1x8xf32>
    %20 = vector.multi_reduction <maximumf>, %19, %cst_12 [2] : vector<1x8x8xf32> to vector<1x8xf32>
    %21 = vector.shape_cast %20 : vector<1x8xf32> to vector<1x8x1xf32>
    %22 = vector.broadcast %21 : vector<1x8x1xf32> to vector<1x8x8xf32>
    %23 = arith.subf %19, %22 : vector<1x8x8xf32>
    %24 = math.exp %23 : vector<1x8x8xf32>
    %cst_13 = arith.constant dense<0.000000e+00> : vector<1x8xf32>
    %25 = vector.multi_reduction <add>, %24, %cst_13 [2] : vector<1x8x8xf32> to vector<1x8xf32>
    %26 = vector.shape_cast %25 : vector<1x8xf32> to vector<1x8x1xf32>
    %27 = tpu.reciprocal %26 {approx = true} : vector<1x8x1xf32> -> vector<1x8x1xf32>
    %28 = vector.broadcast %27 : vector<1x8x1xf32> to vector<1x8x8xf32>
    %29 = arith.mulf %24, %28 : vector<1x8x8xf32>
    "tpu.trace_start"() <{level = 10 : i32, message = "bnm,bmd->bnd"}> : () -> ()
    %cst_14 = arith.constant dense<0.000000e+00> : vector<1x8x8xf32>
    %30 = tpu.matmul %29, %18, %cst_14 {dimension_numbers = #tpu.dot_dimension_numbers<[2], [1], [1], [2], [0, 0, 0, 1, 1, 2], [0], [0]>} : vector<1x8x8xf32>, vector<1x8x8xf32>, vector<1x8x8xf32> -> vector<1x8x8xf32>
    "tpu.trace_stop"() : () -> ()
    %31 = arith.addf %14, %30 : vector<1x8x8xf32>
    %32 = vector.shape_cast %31 : vector<1x8x8xf32> to vector<8x8xf32>
    %c0_15 = arith.constant 0 : index
    %c0_16 = arith.constant 0 : index
    %33 = vector.load %arg5[%c0_15, %c0_16] : memref<8x32xf32, #tpu.memory_space<vmem>>, vector<8x8xf32>
    tpu.vector_store %arg5[%c0_15, %c0_16], %32 {strides = array<i32>} : memref<8x32xf32, #tpu.memory_space<vmem>>, vector<8x8xf32>,
    %34 = vector.extract_strided_slice %12 {offsets = [0, 8], sizes = [8, 8], strides = [1, 1]} : vector<8x96xf32> to vector<8x8xf32>
    %35 = vector.shape_cast %34 : vector<8x8xf32> to vector<1x8x8xf32>
    %36 = vector.extract_strided_slice %12 {offsets = [0, 40], sizes = [8, 8], strides = [1, 1]} : vector<8x96xf32> to vector<8x8xf32>
    %37 = vector.shape_cast %36 : vector<8x8xf32> to vector<1x8x8xf32>
    %38 = vector.extract_strided_slice %12 {offsets = [0, 72], sizes = [8, 8], strides = [1, 1]} : vector<8x96xf32> to vector<8x8xf32>
    %39 = vector.shape_cast %38 : vector<8x8xf32> to vector<1x8x8xf32>
    "tpu.trace_start"() <{level = 10 : i32, message = "bnd,bmd->bnm"}> : () -> ()
    %cst_17 = arith.constant dense<0.000000e+00> : vector<1x8x8xf32>
    %40 = tpu.matmul %35, %37, %cst_17 {dimension_numbers = #tpu.dot_dimension_numbers<[2], [2], [1], [1], [0, 0, 0, 1, 1, 1], [0], [0]>} : vector<1x8x8xf32>, vector<1x8x8xf32>, vector<1x8x8xf32> -> vector<1x8x8xf32>
    "tpu.trace_stop"() : () -> ()
    %cst_18 = arith.constant dense<0xFF800000> : vector<1x8xf32>
    %41 = vector.multi_reduction <maximumf>, %40, %cst_18 [2] : vector<1x8x8xf32> to vector<1x8xf32>
    %42 = vector.shape_cast %41 : vector<1x8xf32> to vector<1x8x1xf32>
    %43 = vector.broadcast %42 : vector<1x8x1xf32> to vector<1x8x8xf32>
    %44 = arith.subf %40, %43 : vector<1x8x8xf32>
    %45 = math.exp %44 : vector<1x8x8xf32>
    %cst_19 = arith.constant dense<0.000000e+00> : vector<1x8xf32>
    %46 = vector.multi_reduction <add>, %45, %cst_19 [2] : vector<1x8x8xf32> to vector<1x8xf32>
    %47 = vector.shape_cast %46 : vector<1x8xf32> to vector<1x8x1xf32>
    %48 = tpu.reciprocal %47 {approx = true} : vector<1x8x1xf32> -> vector<1x8x1xf32>
    %49 = vector.broadcast %48 : vector<1x8x1xf32> to vector<1x8x8xf32>
    %50 = arith.mulf %45, %49 : vector<1x8x8xf32>
    "tpu.trace_start"() <{level = 10 : i32, message = "bnm,bmd->bnd"}> : () -> ()
    %cst_20 = arith.constant dense<0.000000e+00> : vector<1x8x8xf32>
    %51 = tpu.matmul %50, %39, %cst_20 {dimension_numbers = #tpu.dot_dimension_numbers<[2], [1], [1], [2], [0, 0, 0, 1, 1, 2], [0], [0]>} : vector<1x8x8xf32>, vector<1x8x8xf32>, vector<1x8x8xf32> -> vector<1x8x8xf32>
    "tpu.trace_stop"() : () -> ()
    %52 = arith.addf %35, %51 : vector<1x8x8xf32>
    %53 = vector.shape_cast %52 : vector<1x8x8xf32> to vector<8x8xf32>
    %c0_21 = arith.constant 0 : index
    %c8_22 = arith.constant 8 : index
    %54 = vector.load %arg5[%c0_21, %c8_22] : memref<8x32xf32, #tpu.memory_space<vmem>>, vector<8x8xf32>
    tpu.vector_store %arg5[%c0_21, %c8_22], %53 {strides = array<i32>} : memref<8x32xf32, #tpu.memory_space<vmem>>, vector<8x8xf32>,
    %55 = vector.extract_strided_slice %12 {offsets = [0, 16], sizes = [8, 8], strides = [1, 1]} : vector<8x96xf32> to vector<8x8xf32>
    %56 = vector.shape_cast %55 : vector<8x8xf32> to vector<1x8x8xf32>
    %57 = vector.extract_strided_slice %12 {offsets = [0, 48], sizes = [8, 8], strides = [1, 1]} : vector<8x96xf32> to vector<8x8xf32>
    %58 = vector.shape_cast %57 : vector<8x8xf32> to vector<1x8x8xf32>
    %59 = vector.extract_strided_slice %12 {offsets = [0, 80], sizes = [8, 8], strides = [1, 1]} : vector<8x96xf32> to vector<8x8xf32>
    %60 = vector.shape_cast %59 : vector<8x8xf32> to vector<1x8x8xf32>
    "tpu.trace_start"() <{level = 10 : i32, message = "bnd,bmd->bnm"}> : () -> ()
    %cst_23 = arith.constant dense<0.000000e+00> : vector<1x8x8xf32>
    %61 = tpu.matmul %56, %58, %cst_23 {dimension_numbers = #tpu.dot_dimension_numbers<[2], [2], [1], [1], [0, 0, 0, 1, 1, 1], [0], [0]>} : vector<1x8x8xf32>, vector<1x8x8xf32>, vector<1x8x8xf32> -> vector<1x8x8xf32>
    "tpu.trace_stop"() : () -> ()
    %cst_24 = arith.constant dense<0xFF800000> : vector<1x8xf32>
    %62 = vector.multi_reduction <maximumf>, %61, %cst_24 [2] : vector<1x8x8xf32> to vector<1x8xf32>
    %63 = vector.shape_cast %62 : vector<1x8xf32> to vector<1x8x1xf32>
    %64 = vector.broadcast %63 : vector<1x8x1xf32> to vector<1x8x8xf32>
    %65 = arith.subf %61, %64 : vector<1x8x8xf32>
    %66 = math.exp %65 : vector<1x8x8xf32>
    %cst_25 = arith.constant dense<0.000000e+00> : vector<1x8xf32>
    %67 = vector.multi_reduction <add>, %66, %cst_25 [2] : vector<1x8x8xf32> to vector<1x8xf32>
    %68 = vector.shape_cast %67 : vector<1x8xf32> to vector<1x8x1xf32>
    %69 = tpu.reciprocal %68 {approx = true} : vector<1x8x1xf32> -> vector<1x8x1xf32>
    %70 = vector.broadcast %69 : vector<1x8x1xf32> to vector<1x8x8xf32>
    %71 = arith.mulf %66, %70 : vector<1x8x8xf32>
    "tpu.trace_start"() <{level = 10 : i32, message = "bnm,bmd->bnd"}> : () -> ()
    %cst_26 = arith.constant dense<0.000000e+00> : vector<1x8x8xf32>
    %72 = tpu.matmul %71, %60, %cst_26 {dimension_numbers = #tpu.dot_dimension_numbers<[2], [1], [1], [2], [0, 0, 0, 1, 1, 2], [0], [0]>} : vector<1x8x8xf32>, vector<1x8x8xf32>, vector<1x8x8xf32> -> vector<1x8x8xf32>
    "tpu.trace_stop"() : () -> ()
    %73 = arith.addf %56, %72 : vector<1x8x8xf32>
    %74 = vector.shape_cast %73 : vector<1x8x8xf32> to vector<8x8xf32>
    %c0_27 = arith.constant 0 : index
    %c16 = arith.constant 16 : index
    %75 = vector.load %arg5[%c0_27, %c16] : memref<8x32xf32, #tpu.memory_space<vmem>>, vector<8x8xf32>
    tpu.vector_store %arg5[%c0_27, %c16], %74 {strides = array<i32>} : memref<8x32xf32, #tpu.memory_space<vmem>>, vector<8x8xf32>,
    %76 = vector.extract_strided_slice %12 {offsets = [0, 24], sizes = [8, 8], strides = [1, 1]} : vector<8x96xf32> to vector<8x8xf32>
    %77 = vector.shape_cast %76 : vector<8x8xf32> to vector<1x8x8xf32>
    %78 = vector.extract_strided_slice %12 {offsets = [0, 56], sizes = [8, 8], strides = [1, 1]} : vector<8x96xf32> to vector<8x8xf32>
    %79 = vector.shape_cast %78 : vector<8x8xf32> to vector<1x8x8xf32>
    %80 = vector.extract_strided_slice %12 {offsets = [0, 88], sizes = [8, 8], strides = [1, 1]} : vector<8x96xf32> to vector<8x8xf32>
    %81 = vector.shape_cast %80 : vector<8x8xf32> to vector<1x8x8xf32>
    "tpu.trace_start"() <{level = 10 : i32, message = "bnd,bmd->bnm"}> : () -> ()
    %cst_28 = arith.constant dense<0.000000e+00> : vector<1x8x8xf32>
    %82 = tpu.matmul %77, %79, %cst_28 {dimension_numbers = #tpu.dot_dimension_numbers<[2], [2], [1], [1], [0, 0, 0, 1, 1, 1], [0], [0]>} : vector<1x8x8xf32>, vector<1x8x8xf32>, vector<1x8x8xf32> -> vector<1x8x8xf32>
    "tpu.trace_stop"() : () -> ()
    %cst_29 = arith.constant dense<0xFF800000> : vector<1x8xf32>
    %83 = vector.multi_reduction <maximumf>, %82, %cst_29 [2] : vector<1x8x8xf32> to vector<1x8xf32>
    %84 = vector.shape_cast %83 : vector<1x8xf32> to vector<1x8x1xf32>
    %85 = vector.broadcast %84 : vector<1x8x1xf32> to vector<1x8x8xf32>
    %86 = arith.subf %82, %85 : vector<1x8x8xf32>
    %87 = math.exp %86 : vector<1x8x8xf32>
    %cst_30 = arith.constant dense<0.000000e+00> : vector<1x8xf32>
    %88 = vector.multi_reduction <add>, %87, %cst_30 [2] : vector<1x8x8xf32> to vector<1x8xf32>
    %89 = vector.shape_cast %88 : vector<1x8xf32> to vector<1x8x1xf32>
    %90 = tpu.reciprocal %89 {approx = true} : vector<1x8x1xf32> -> vector<1x8x1xf32>
    %91 = vector.broadcast %90 : vector<1x8x1xf32> to vector<1x8x8xf32>
    %92 = arith.mulf %87, %91 : vector<1x8x8xf32>
    "tpu.trace_start"() <{level = 10 : i32, message = "bnm,bmd->bnd"}> : () -> ()
    %cst_31 = arith.constant dense<0.000000e+00> : vector<1x8x8xf32>
    %93 = tpu.matmul %92, %81, %cst_31 {dimension_numbers = #tpu.dot_dimension_numbers<[2], [1], [1], [2], [0, 0, 0, 1, 1, 2], [0], [0]>} : vector<1x8x8xf32>, vector<1x8x8xf32>, vector<1x8x8xf32> -> vector<1x8x8xf32>
    "tpu.trace_stop"() : () -> ()
    %94 = arith.addf %77, %93 : vector<1x8x8xf32>
    %95 = vector.shape_cast %94 : vector<1x8x8xf32> to vector<8x8xf32>
    %c0_32 = arith.constant 0 : index
    %c24 = arith.constant 24 : index
    %96 = vector.load %arg5[%c0_32, %c24] : memref<8x32xf32, #tpu.memory_space<vmem>>, vector<8x8xf32>
    tpu.vector_store %arg5[%c0_32, %c24], %95 {strides = array<i32>} : memref<8x32xf32, #tpu.memory_space<vmem>>, vector<8x8xf32>,
    %c0_33 = arith.constant 0 : index
    %c0_34 = arith.constant 0 : index
    %97 = vector.load %arg5[%c0_33, %c0_34] : memref<8x32xf32, #tpu.memory_space<vmem>>, vector<8x32xf32>
    %cst_35 = arith.constant dense<0.000000e+00> : vector<8xf32>
    %98 = vector.multi_reduction <add>, %97, %cst_35 [1] : vector<8x32xf32> to vector<8xf32>
    %99 = vector.shape_cast %98 : vector<8xf32> to vector<8x1xf32>
    %cst_36 = arith.constant 3.125000e-02 : f32
    %100 = vector.broadcast %cst_36 : f32 to vector<8x1xf32>
    %101 = arith.mulf %99, %100 : vector<8x1xf32>
    %102 = arith.mulf %97, %97 : vector<8x32xf32>
    %cst_37 = arith.constant dense<0.000000e+00> : vector<8xf32>
    %103 = vector.multi_reduction <add>, %102, %cst_37 [1] : vector<8x32xf32> to vector<8xf32>
    %104 = vector.shape_cast %103 : vector<8xf32> to vector<8x1xf32>
    %cst_38 = arith.constant 3.125000e-02 : f32
    %105 = vector.broadcast %cst_38 : f32 to vector<8x1xf32>
    %106 = arith.mulf %104, %105 : vector<8x1xf32>
    %107 = arith.mulf %101, %101 : vector<8x1xf32>
    %108 = arith.subf %106, %107 : vector<8x1xf32>
    %109 = vector.broadcast %101 : vector<8x1xf32> to vector<8x32xf32>
    %110 = arith.subf %97, %109 : vector<8x32xf32>
    %cst_39 = arith.constant 9.99999974E-6 : f32
    %111 = vector.broadcast %cst_39 : f32 to vector<8x1xf32>
    %112 = arith.addf %108, %111 : vector<8x1xf32>
    %113 = math.rsqrt %112 : vector<8x1xf32>
    %114 = vector.broadcast %113 : vector<8x1xf32> to vector<8x32xf32>
    %115 = arith.mulf %110, %114 : vector<8x32xf32>
    %116 = vector.broadcast %6 : vector<1x32xf32> to vector<8x32xf32>
    %117 = arith.mulf %115, %116 : vector<8x32xf32>
    %118 = vector.broadcast %7 : vector<1x32xf32> to vector<8x32xf32>
    %119 = arith.addf %117, %118 : vector<8x32xf32>
    %cst_40 = arith.constant dense<0.000000e+00> : vector<8x32xf32>
    %120 = tpu.matmul %119, %3, %cst_40 {dimension_numbers = #tpu.dot_dimension_numbers<[1], [0], [0], [1], [0, 0, 1, 1], [], []>} : vector<8x32xf32>, vector<32x32xf32>, vector<8x32xf32> -> vector<8x32xf32>
    %121 = vector.broadcast %5 : vector<1x32xf32> to vector<8x32xf32>
    %122 = arith.addf %120, %121 : vector<8x32xf32>
    %cst_41 = arith.constant 0.000000e+00 : f32
    %123 = vector.broadcast %cst_41 : f32 to vector<8x32xf32>
    %124 = arith.maximumf %122, %123 : vector<8x32xf32>
    %125 = arith.addf %119, %124 : vector<8x32xf32>
    %cst_42 = arith.constant dense<0.000000e+00> : vector<8xf32>
    %126 = vector.multi_reduction <add>, %125, %cst_42 [1] : vector<8x32xf32> to vector<8xf32>
    %127 = vector.shape_cast %126 : vector<8xf32> to vector<8x1xf32>
    %cst_43 = arith.constant 3.125000e-02 : f32
    %128 = vector.broadcast %cst_43 : f32 to vector<8x1xf32>
    %129 = arith.mulf %127, %128 : vector<8x1xf32>
    %130 = arith.mulf %125, %125 : vector<8x32xf32>
    %cst_44 = arith.constant dense<0.000000e+00> : vector<8xf32>
    %131 = vector.multi_reduction <add>, %130, %cst_44 [1] : vector<8x32xf32> to vector<8xf32>
    %132 = vector.shape_cast %131 : vector<8xf32> to vector<8x1xf32>
    %cst_45 = arith.constant 3.125000e-02 : f32
    %133 = vector.broadcast %cst_45 : f32 to vector<8x1xf32>
    %134 = arith.mulf %132, %133 : vector<8x1xf32>
    %135 = arith.mulf %129, %129 : vector<8x1xf32>
    %136 = arith.subf %134, %135 : vector<8x1xf32>
    %137 = vector.broadcast %129 : vector<8x1xf32> to vector<8x32xf32>
    %138 = arith.subf %125, %137 : vector<8x32xf32>
    %cst_46 = arith.constant 9.99999974E-6 : f32
    %139 = vector.broadcast %cst_46 : f32 to vector<8x1xf32>
    %140 = arith.addf %136, %139 : vector<8x1xf32>
    %141 = math.rsqrt %140 : vector<8x1xf32>
    %142 = vector.broadcast %141 : vector<8x1xf32> to vector<8x32xf32>
    %143 = arith.mulf %138, %142 : vector<8x32xf32>
    %144 = vector.broadcast %8 : vector<1x32xf32> to vector<8x32xf32>
    %145 = arith.mulf %143, %144 : vector<8x32xf32>
    %146 = vector.broadcast %9 : vector<1x32xf32> to vector<8x32xf32>
    %147 = arith.addf %145, %146 : vector<8x32xf32>
    %c48 = arith.constant 48 : index
    %c0_47 = arith.constant 0 : index
    %148 = vector.load %arg2[%c48, %c0_47] : memref<192x96xf32, #tpu.memory_space<vmem>>, vector<32x96xf32>
    %c80 = arith.constant 80 : index
    %c0_48 = arith.constant 0 : index
    %149 = vector.load %arg2[%c80, %c0_48] : memref<192x96xf32, #tpu.memory_space<vmem>>, vector<32x32xf32>
    %c112 = arith.constant 112 : index
    %c0_49 = arith.constant 0 : index
    %150 = vector.load %arg2[%c112, %c0_49] : memref<192x96xf32, #tpu.memory_space<vmem>>, vector<1x96xf32>
    %c113 = arith.constant 113 : index
    %c0_50 = arith.constant 0 : index
    %151 = vector.load %arg2[%c113, %c0_50] : memref<192x96xf32, #tpu.memory_space<vmem>>, vector<1x32xf32>
    %c114 = arith.constant 114 : index
    %c0_51 = arith.constant 0 : index
    %152 = vector.load %arg2[%c114, %c0_51] : memref<192x96xf32, #tpu.memory_space<vmem>>, vector<1x32xf32>
    %c115 = arith.constant 115 : index
    %c0_52 = arith.constant 0 : index
    %153 = vector.load %arg2[%c115, %c0_52] : memref<192x96xf32, #tpu.memory_space<vmem>>, vector<1x32xf32>
    %c116 = arith.constant 116 : index
    %c0_53 = arith.constant 0 : index
    %154 = vector.load %arg2[%c116, %c0_53] : memref<192x96xf32, #tpu.memory_space<vmem>>, vector<1x32xf32>
    %c117 = arith.constant 117 : index
    %c0_54 = arith.constant 0 : index
    %155 = vector.load %arg2[%c117, %c0_54] : memref<192x96xf32, #tpu.memory_space<vmem>>, vector<1x32xf32>
    %cst_55 = arith.constant dense<0.000000e+00> : vector<8x96xf32>
    %156 = tpu.matmul %147, %148, %cst_55 {dimension_numbers = #tpu.dot_dimension_numbers<[1], [0], [0], [1], [0, 0, 1, 1], [], []>} : vector<8x32xf32>, vector<32x96xf32>, vector<8x96xf32> -> vector<8x96xf32>
    %157 = vector.broadcast %150 : vector<1x96xf32> to vector<8x96xf32>
    %158 = arith.addf %156, %157 : vector<8x96xf32>
    %159 = vector.extract_strided_slice %158 {offsets = [0, 0], sizes = [8, 8], strides = [1, 1]} : vector<8x96xf32> to vector<8x8xf32>
    %160 = vector.shape_cast %159 : vector<8x8xf32> to vector<1x8x8xf32>
    %161 = vector.extract_strided_slice %158 {offsets = [0, 32], sizes = [8, 8], strides = [1, 1]} : vector<8x96xf32> to vector<8x8xf32>
    %162 = vector.shape_cast %161 : vector<8x8xf32> to vector<1x8x8xf32>
    %163 = vector.extract_strided_slice %158 {offsets = [0, 64], sizes = [8, 8], strides = [1, 1]} : vector<8x96xf32> to vector<8x8xf32>
    %164 = vector.shape_cast %163 : vector<8x8xf32> to vector<1x8x8xf32>
    "tpu.trace_start"() <{level = 10 : i32, message = "bnd,bmd->bnm"}> : () -> ()
    %cst_56 = arith.constant dense<0.000000e+00> : vector<1x8x8xf32>
    %165 = tpu.matmul %160, %162, %cst_56 {dimension_numbers = #tpu.dot_dimension_numbers<[2], [2], [1], [1], [0, 0, 0, 1, 1, 1], [0], [0]>} : vector<1x8x8xf32>, vector<1x8x8xf32>, vector<1x8x8xf32> -> vector<1x8x8xf32>
    "tpu.trace_stop"() : () -> ()
    %cst_57 = arith.constant dense<0xFF800000> : vector<1x8xf32>
    %166 = vector.multi_reduction <maximumf>, %165, %cst_57 [2] : vector<1x8x8xf32> to vector<1x8xf32>
    %167 = vector.shape_cast %166 : vector<1x8xf32> to vector<1x8x1xf32>
    %168 = vector.broadcast %167 : vector<1x8x1xf32> to vector<1x8x8xf32>
    %169 = arith.subf %165, %168 : vector<1x8x8xf32>
    %170 = math.exp %169 : vector<1x8x8xf32>
    %cst_58 = arith.constant dense<0.000000e+00> : vector<1x8xf32>
    %171 = vector.multi_reduction <add>, %170, %cst_58 [2] : vector<1x8x8xf32> to vector<1x8xf32>
    %172 = vector.shape_cast %171 : vector<1x8xf32> to vector<1x8x1xf32>
    %173 = tpu.reciprocal %172 {approx = true} : vector<1x8x1xf32> -> vector<1x8x1xf32>
    %174 = vector.broadcast %173 : vector<1x8x1xf32> to vector<1x8x8xf32>
    %175 = arith.mulf %170, %174 : vector<1x8x8xf32>
    "tpu.trace_start"() <{level = 10 : i32, message = "bnm,bmd->bnd"}> : () -> ()
    %cst_59 = arith.constant dense<0.000000e+00> : vector<1x8x8xf32>
    %176 = tpu.matmul %175, %164, %cst_59 {dimension_numbers = #tpu.dot_dimension_numbers<[2], [1], [1], [2], [0, 0, 0, 1, 1, 2], [0], [0]>} : vector<1x8x8xf32>, vector<1x8x8xf32>, vector<1x8x8xf32> -> vector<1x8x8xf32>
    "tpu.trace_stop"() : () -> ()
    %177 = arith.addf %160, %176 : vector<1x8x8xf32>
    %178 = vector.shape_cast %177 : vector<1x8x8xf32> to vector<8x8xf32>
    %c0_60 = arith.constant 0 : index
    %c0_61 = arith.constant 0 : index
    %179 = vector.load %arg5[%c0_60, %c0_61] : memref<8x32xf32, #tpu.memory_space<vmem>>, vector<8x8xf32>
    tpu.vector_store %arg5[%c0_60, %c0_61], %178 {strides = array<i32>} : memref<8x32xf32, #tpu.memory_space<vmem>>, vector<8x8xf32>,
    %180 = vector.extract_strided_slice %158 {offsets = [0, 8], sizes = [8, 8], strides = [1, 1]} : vector<8x96xf32> to vector<8x8xf32>
    %181 = vector.shape_cast %180 : vector<8x8xf32> to vector<1x8x8xf32>
    %182 = vector.extract_strided_slice %158 {offsets = [0, 40], sizes = [8, 8], strides = [1, 1]} : vector<8x96xf32> to vector<8x8xf32>
    %183 = vector.shape_cast %182 : vector<8x8xf32> to vector<1x8x8xf32>
    %184 = vector.extract_strided_slice %158 {offsets = [0, 72], sizes = [8, 8], strides = [1, 1]} : vector<8x96xf32> to vector<8x8xf32>
    %185 = vector.shape_cast %184 : vector<8x8xf32> to vector<1x8x8xf32>
    "tpu.trace_start"() <{level = 10 : i32, message = "bnd,bmd->bnm"}> : () -> ()
    %cst_62 = arith.constant dense<0.000000e+00> : vector<1x8x8xf32>
    %186 = tpu.matmul %181, %183, %cst_62 {dimension_numbers = #tpu.dot_dimension_numbers<[2], [2], [1], [1], [0, 0, 0, 1, 1, 1], [0], [0]>} : vector<1x8x8xf32>, vector<1x8x8xf32>, vector<1x8x8xf32> -> vector<1x8x8xf32>
    "tpu.trace_stop"() : () -> ()
    %cst_63 = arith.constant dense<0xFF800000> : vector<1x8xf32>
    %187 = vector.multi_reduction <maximumf>, %186, %cst_63 [2] : vector<1x8x8xf32> to vector<1x8xf32>
    %188 = vector.shape_cast %187 : vector<1x8xf32> to vector<1x8x1xf32>
    %189 = vector.broadcast %188 : vector<1x8x1xf32> to vector<1x8x8xf32>
    %190 = arith.subf %186, %189 : vector<1x8x8xf32>
    %191 = math.exp %190 : vector<1x8x8xf32>
    %cst_64 = arith.constant dense<0.000000e+00> : vector<1x8xf32>
    %192 = vector.multi_reduction <add>, %191, %cst_64 [2] : vector<1x8x8xf32> to vector<1x8xf32>
    %193 = vector.shape_cast %192 : vector<1x8xf32> to vector<1x8x1xf32>
    %194 = tpu.reciprocal %193 {approx = true} : vector<1x8x1xf32> -> vector<1x8x1xf32>
    %195 = vector.broadcast %194 : vector<1x8x1xf32> to vector<1x8x8xf32>
    %196 = arith.mulf %191, %195 : vector<1x8x8xf32>
    "tpu.trace_start"() <{level = 10 : i32, message = "bnm,bmd->bnd"}> : () -> ()
    %cst_65 = arith.constant dense<0.000000e+00> : vector<1x8x8xf32>
    %197 = tpu.matmul %196, %185, %cst_65 {dimension_numbers = #tpu.dot_dimension_numbers<[2], [1], [1], [2], [0, 0, 0, 1, 1, 2], [0], [0]>} : vector<1x8x8xf32>, vector<1x8x8xf32>, vector<1x8x8xf32> -> vector<1x8x8xf32>
    "tpu.trace_stop"() : () -> ()
    %198 = arith.addf %181, %197 : vector<1x8x8xf32>
    %199 = vector.shape_cast %198 : vector<1x8x8xf32> to vector<8x8xf32>
    %c0_66 = arith.constant 0 : index
    %c8_67 = arith.constant 8 : index
    %200 = vector.load %arg5[%c0_66, %c8_67] : memref<8x32xf32, #tpu.memory_space<vmem>>, vector<8x8xf32>
    tpu.vector_store %arg5[%c0_66, %c8_67], %199 {strides = array<i32>} : memref<8x32xf32, #tpu.memory_space<vmem>>, vector<8x8xf32>,
    %201 = vector.extract_strided_slice %158 {offsets = [0, 16], sizes = [8, 8], strides = [1, 1]} : vector<8x96xf32> to vector<8x8xf32>
    %202 = vector.shape_cast %201 : vector<8x8xf32> to vector<1x8x8xf32>
    %203 = vector.extract_strided_slice %158 {offsets = [0, 48], sizes = [8, 8], strides = [1, 1]} : vector<8x96xf32> to vector<8x8xf32>
    %204 = vector.shape_cast %203 : vector<8x8xf32> to vector<1x8x8xf32>
    %205 = vector.extract_strided_slice %158 {offsets = [0, 80], sizes = [8, 8], strides = [1, 1]} : vector<8x96xf32> to vector<8x8xf32>
    %206 = vector.shape_cast %205 : vector<8x8xf32> to vector<1x8x8xf32>
    "tpu.trace_start"() <{level = 10 : i32, message = "bnd,bmd->bnm"}> : () -> ()
    %cst_68 = arith.constant dense<0.000000e+00> : vector<1x8x8xf32>
    %207 = tpu.matmul %202, %204, %cst_68 {dimension_numbers = #tpu.dot_dimension_numbers<[2], [2], [1], [1], [0, 0, 0, 1, 1, 1], [0], [0]>} : vector<1x8x8xf32>, vector<1x8x8xf32>, vector<1x8x8xf32> -> vector<1x8x8xf32>
    "tpu.trace_stop"() : () -> ()
    %cst_69 = arith.constant dense<0xFF800000> : vector<1x8xf32>
    %208 = vector.multi_reduction <maximumf>, %207, %cst_69 [2] : vector<1x8x8xf32> to vector<1x8xf32>
    %209 = vector.shape_cast %208 : vector<1x8xf32> to vector<1x8x1xf32>
    %210 = vector.broadcast %209 : vector<1x8x1xf32> to vector<1x8x8xf32>
    %211 = arith.subf %207, %210 : vector<1x8x8xf32>
    %212 = math.exp %211 : vector<1x8x8xf32>
    %cst_70 = arith.constant dense<0.000000e+00> : vector<1x8xf32>
    %213 = vector.multi_reduction <add>, %212, %cst_70 [2] : vector<1x8x8xf32> to vector<1x8xf32>
    %214 = vector.shape_cast %213 : vector<1x8xf32> to vector<1x8x1xf32>
    %215 = tpu.reciprocal %214 {approx = true} : vector<1x8x1xf32> -> vector<1x8x1xf32>
    %216 = vector.broadcast %215 : vector<1x8x1xf32> to vector<1x8x8xf32>
    %217 = arith.mulf %212, %216 : vector<1x8x8xf32>
    "tpu.trace_start"() <{level = 10 : i32, message = "bnm,bmd->bnd"}> : () -> ()
    %cst_71 = arith.constant dense<0.000000e+00> : vector<1x8x8xf32>
    %218 = tpu.matmul %217, %206, %cst_71 {dimension_numbers = #tpu.dot_dimension_numbers<[2], [1], [1], [2], [0, 0, 0, 1, 1, 2], [0], [0]>} : vector<1x8x8xf32>, vector<1x8x8xf32>, vector<1x8x8xf32> -> vector<1x8x8xf32>
    "tpu.trace_stop"() : () -> ()
    %219 = arith.addf %202, %218 : vector<1x8x8xf32>
    %220 = vector.shape_cast %219 : vector<1x8x8xf32> to vector<8x8xf32>
    %c0_72 = arith.constant 0 : index
    %c16_73 = arith.constant 16 : index
    %221 = vector.load %arg5[%c0_72, %c16_73] : memref<8x32xf32, #tpu.memory_space<vmem>>, vector<8x8xf32>
    tpu.vector_store %arg5[%c0_72, %c16_73], %220 {strides = array<i32>} : memref<8x32xf32, #tpu.memory_space<vmem>>, vector<8x8xf32>,
    %222 = vector.extract_strided_slice %158 {offsets = [0, 24], sizes = [8, 8], strides = [1, 1]} : vector<8x96xf32> to vector<8x8xf32>
    %223 = vector.shape_cast %222 : vector<8x8xf32> to vector<1x8x8xf32>
    %224 = vector.extract_strided_slice %158 {offsets = [0, 56], sizes = [8, 8], strides = [1, 1]} : vector<8x96xf32> to vector<8x8xf32>
    %225 = vector.shape_cast %224 : vector<8x8xf32> to vector<1x8x8xf32>
    %226 = vector.extract_strided_slice %158 {offsets = [0, 88], sizes = [8, 8], strides = [1, 1]} : vector<8x96xf32> to vector<8x8xf32>
    %227 = vector.shape_cast %226 : vector<8x8xf32> to vector<1x8x8xf32>
    "tpu.trace_start"() <{level = 10 : i32, message = "bnd,bmd->bnm"}> : () -> ()
    %cst_74 = arith.constant dense<0.000000e+00> : vector<1x8x8xf32>
    %228 = tpu.matmul %223, %225, %cst_74 {dimension_numbers = #tpu.dot_dimension_numbers<[2], [2], [1], [1], [0, 0, 0, 1, 1, 1], [0], [0]>} : vector<1x8x8xf32>, vector<1x8x8xf32>, vector<1x8x8xf32> -> vector<1x8x8xf32>
    "tpu.trace_stop"() : () -> ()
    %cst_75 = arith.constant dense<0xFF800000> : vector<1x8xf32>
    %229 = vector.multi_reduction <maximumf>, %228, %cst_75 [2] : vector<1x8x8xf32> to vector<1x8xf32>
    %230 = vector.shape_cast %229 : vector<1x8xf32> to vector<1x8x1xf32>
    %231 = vector.broadcast %230 : vector<1x8x1xf32> to vector<1x8x8xf32>
    %232 = arith.subf %228, %231 : vector<1x8x8xf32>
    %233 = math.exp %232 : vector<1x8x8xf32>
    %cst_76 = arith.constant dense<0.000000e+00> : vector<1x8xf32>
    %234 = vector.multi_reduction <add>, %233, %cst_76 [2] : vector<1x8x8xf32> to vector<1x8xf32>
    %235 = vector.shape_cast %234 : vector<1x8xf32> to vector<1x8x1xf32>
    %236 = tpu.reciprocal %235 {approx = true} : vector<1x8x1xf32> -> vector<1x8x1xf32>
    %237 = vector.broadcast %236 : vector<1x8x1xf32> to vector<1x8x8xf32>
    %238 = arith.mulf %233, %237 : vector<1x8x8xf32>
    "tpu.trace_start"() <{level = 10 : i32, message = "bnm,bmd->bnd"}> : () -> ()
    %cst_77 = arith.constant dense<0.000000e+00> : vector<1x8x8xf32>
    %239 = tpu.matmul %238, %227, %cst_77 {dimension_numbers = #tpu.dot_dimension_numbers<[2], [1], [1], [2], [0, 0, 0, 1, 1, 2], [0], [0]>} : vector<1x8x8xf32>, vector<1x8x8xf32>, vector<1x8x8xf32> -> vector<1x8x8xf32>
    "tpu.trace_stop"() : () -> ()
    %240 = arith.addf %223, %239 : vector<1x8x8xf32>
    %241 = vector.shape_cast %240 : vector<1x8x8xf32> to vector<8x8xf32>
    %c0_78 = arith.constant 0 : index
    %c24_79 = arith.constant 24 : index
    %242 = vector.load %arg5[%c0_78, %c24_79] : memref<8x32xf32, #tpu.memory_space<vmem>>, vector<8x8xf32>
    tpu.vector_store %arg5[%c0_78, %c24_79], %241 {strides = array<i32>} : memref<8x32xf32, #tpu.memory_space<vmem>>, vector<8x8xf32>,
    %c0_80 = arith.constant 0 : index
    %c0_81 = arith.constant 0 : index
    %243 = vector.load %arg5[%c0_80, %c0_81] : memref<8x32xf32, #tpu.memory_space<vmem>>, vector<8x32xf32>
    %cst_82 = arith.constant dense<0.000000e+00> : vector<8xf32>
    %244 = vector.multi_reduction <add>, %243, %cst_82 [1] : vector<8x32xf32> to vector<8xf32>
    %245 = vector.shape_cast %244 : vector<8xf32> to vector<8x1xf32>
    %cst_83 = arith.constant 3.125000e-02 : f32
    %246 = vector.broadcast %cst_83 : f32 to vector<8x1xf32>
    %247 = arith.mulf %245, %246 : vector<8x1xf32>
    %248 = arith.mulf %243, %243 : vector<8x32xf32>
    %cst_84 = arith.constant dense<0.000000e+00> : vector<8xf32>
    %249 = vector.multi_reduction <add>, %248, %cst_84 [1] : vector<8x32xf32> to vector<8xf32>
    %250 = vector.shape_cast %249 : vector<8xf32> to vector<8x1xf32>
    %cst_85 = arith.constant 3.125000e-02 : f32
    %251 = vector.broadcast %cst_85 : f32 to vector<8x1xf32>
    %252 = arith.mulf %250, %251 : vector<8x1xf32>
    %253 = arith.mulf %247, %247 : vector<8x1xf32>
    %254 = arith.subf %252, %253 : vector<8x1xf32>
    %255 = vector.broadcast %247 : vector<8x1xf32> to vector<8x32xf32>
    %256 = arith.subf %243, %255 : vector<8x32xf32>
    %cst_86 = arith.constant 9.99999974E-6 : f32
    %257 = vector.broadcast %cst_86 : f32 to vector<8x1xf32>
    %258 = arith.addf %254, %257 : vector<8x1xf32>
    %259 = math.rsqrt %258 : vector<8x1xf32>
    %260 = vector.broadcast %259 : vector<8x1xf32> to vector<8x32xf32>
    %261 = arith.mulf %256, %260 : vector<8x32xf32>
    %262 = vector.broadcast %152 : vector<1x32xf32> to vector<8x32xf32>
    %263 = arith.mulf %261, %262 : vector<8x32xf32>
    %264 = vector.broadcast %153 : vector<1x32xf32> to vector<8x32xf32>
    %265 = arith.addf %263, %264 : vector<8x32xf32>
    %cst_87 = arith.constant dense<0.000000e+00> : vector<8x32xf32>
    %266 = tpu.matmul %265, %149, %cst_87 {dimension_numbers = #tpu.dot_dimension_numbers<[1], [0], [0], [1], [0, 0, 1, 1], [], []>} : vector<8x32xf32>, vector<32x32xf32>, vector<8x32xf32> -> vector<8x32xf32>
    %267 = vector.broadcast %151 : vector<1x32xf32> to vector<8x32xf32>
    %268 = arith.addf %266, %267 : vector<8x32xf32>
    %cst_88 = arith.constant 0.000000e+00 : f32
    %269 = vector.broadcast %cst_88 : f32 to vector<8x32xf32>
    %270 = arith.maximumf %268, %269 : vector<8x32xf32>
    %271 = arith.addf %265, %270 : vector<8x32xf32>
    %cst_89 = arith.constant dense<0.000000e+00> : vector<8xf32>
    %272 = vector.multi_reduction <add>, %271, %cst_89 [1] : vector<8x32xf32> to vector<8xf32>
    %273 = vector.shape_cast %272 : vector<8xf32> to vector<8x1xf32>
    %cst_90 = arith.constant 3.125000e-02 : f32
    %274 = vector.broadcast %cst_90 : f32 to vector<8x1xf32>
    %275 = arith.mulf %273, %274 : vector<8x1xf32>
    %276 = arith.mulf %271, %271 : vector<8x32xf32>
    %cst_91 = arith.constant dense<0.000000e+00> : vector<8xf32>
    %277 = vector.multi_reduction <add>, %276, %cst_91 [1] : vector<8x32xf32> to vector<8xf32>
    %278 = vector.shape_cast %277 : vector<8xf32> to vector<8x1xf32>
    %cst_92 = arith.constant 3.125000e-02 : f32
    %279 = vector.broadcast %cst_92 : f32 to vector<8x1xf32>
    %280 = arith.mulf %278, %279 : vector<8x1xf32>
    %281 = arith.mulf %275, %275 : vector<8x1xf32>
    %282 = arith.subf %280, %281 : vector<8x1xf32>
    %283 = vector.broadcast %275 : vector<8x1xf32> to vector<8x32xf32>
    %284 = arith.subf %271, %283 : vector<8x32xf32>
    %cst_93 = arith.constant 9.99999974E-6 : f32
    %285 = vector.broadcast %cst_93 : f32 to vector<8x1xf32>
    %286 = arith.addf %282, %285 : vector<8x1xf32>
    %287 = math.rsqrt %286 : vector<8x1xf32>
    %288 = vector.broadcast %287 : vector<8x1xf32> to vector<8x32xf32>
    %289 = arith.mulf %284, %288 : vector<8x32xf32>
    %290 = vector.broadcast %154 : vector<1x32xf32> to vector<8x32xf32>
    %291 = arith.mulf %289, %290 : vector<8x32xf32>
    %292 = vector.broadcast %155 : vector<1x32xf32> to vector<8x32xf32>
    %293 = arith.addf %291, %292 : vector<8x32xf32>
    %294 = vector.shape_cast %293 : vector<8x32xf32> to vector<1x8x32xf32>
    %295 = vector.extract_strided_slice %294 {offsets = [0, 0, 0], sizes = [1, 1, 32], strides = [1, 1, 1]} : vector<1x8x32xf32> to vector<1x1x32xf32>
    %296 = vector.shape_cast %295 : vector<1x1x32xf32> to vector<1x32xf32>
    %297 = vector.extract_strided_slice %294 {offsets = [0, 1, 0], sizes = [1, 1, 32], strides = [1, 1, 1]} : vector<1x8x32xf32> to vector<1x1x32xf32>
    %298 = vector.shape_cast %297 : vector<1x1x32xf32> to vector<1x32xf32>
    %299 = arith.addf %296, %298 : vector<1x32xf32>
    %300 = vector.extract_strided_slice %294 {offsets = [0, 2, 0], sizes = [1, 1, 32], strides = [1, 1, 1]} : vector<1x8x32xf32> to vector<1x1x32xf32>
    %301 = vector.shape_cast %300 : vector<1x1x32xf32> to vector<1x32xf32>
    %302 = arith.addf %299, %301 : vector<1x32xf32>
    %303 = vector.extract_strided_slice %294 {offsets = [0, 3, 0], sizes = [1, 1, 32], strides = [1, 1, 1]} : vector<1x8x32xf32> to vector<1x1x32xf32>
    %304 = vector.shape_cast %303 : vector<1x1x32xf32> to vector<1x32xf32>
    %305 = arith.addf %302, %304 : vector<1x32xf32>
    %306 = vector.extract_strided_slice %294 {offsets = [0, 4, 0], sizes = [1, 1, 32], strides = [1, 1, 1]} : vector<1x8x32xf32> to vector<1x1x32xf32>
    %307 = vector.shape_cast %306 : vector<1x1x32xf32> to vector<1x32xf32>
    %308 = arith.addf %305, %307 : vector<1x32xf32>
    %309 = vector.extract_strided_slice %294 {offsets = [0, 5, 0], sizes = [1, 1, 32], strides = [1, 1, 1]} : vector<1x8x32xf32> to vector<1x1x32xf32>
    %310 = vector.shape_cast %309 : vector<1x1x32xf32> to vector<1x32xf32>
    %311 = arith.addf %308, %310 : vector<1x32xf32>
    %312 = vector.extract_strided_slice %294 {offsets = [0, 6, 0], sizes = [1, 1, 32], strides = [1, 1, 1]} : vector<1x8x32xf32> to vector<1x1x32xf32>
    %313 = vector.shape_cast %312 : vector<1x1x32xf32> to vector<1x32xf32>
    %314 = arith.addf %311, %313 : vector<1x32xf32>
    %315 = vector.extract_strided_slice %294 {offsets = [0, 7, 0], sizes = [1, 1, 32], strides = [1, 1, 1]} : vector<1x8x32xf32> to vector<1x1x32xf32>
    %316 = vector.shape_cast %315 : vector<1x1x32xf32> to vector<1x32xf32>
    %317 = arith.addf %314, %316 : vector<1x32xf32>
    %c120 = arith.constant 120 : index
    %c0_94 = arith.constant 0 : index
    %318 = vector.load %arg2[%c120, %c0_94] : memref<192x96xf32, #tpu.memory_space<vmem>>, vector<32x96xf32>
    %c152 = arith.constant 152 : index
    %c0_95 = arith.constant 0 : index
    %319 = vector.load %arg2[%c152, %c0_95] : memref<192x96xf32, #tpu.memory_space<vmem>>, vector<32x32xf32>
    %c184 = arith.constant 184 : index
    %c0_96 = arith.constant 0 : index
    %320 = vector.load %arg2[%c184, %c0_96] : memref<192x96xf32, #tpu.memory_space<vmem>>, vector<1x96xf32>
    %c185 = arith.constant 185 : index
    %c0_97 = arith.constant 0 : index
    %321 = vector.load %arg2[%c185, %c0_97] : memref<192x96xf32, #tpu.memory_space<vmem>>, vector<1x32xf32>
    %c186 = arith.constant 186 : index
    %c0_98 = arith.constant 0 : index
    %322 = vector.load %arg2[%c186, %c0_98] : memref<192x96xf32, #tpu.memory_space<vmem>>, vector<1x32xf32>
    %c187 = arith.constant 187 : index
    %c0_99 = arith.constant 0 : index
    %323 = vector.load %arg2[%c187, %c0_99] : memref<192x96xf32, #tpu.memory_space<vmem>>, vector<1x32xf32>
    %c188 = arith.constant 188 : index
    %c0_100 = arith.constant 0 : index
    %324 = vector.load %arg2[%c188, %c0_100] : memref<192x96xf32, #tpu.memory_space<vmem>>, vector<1x32xf32>
    %c189 = arith.constant 189 : index
    %c0_101 = arith.constant 0 : index
    %325 = vector.load %arg2[%c189, %c0_101] : memref<192x96xf32, #tpu.memory_space<vmem>>, vector<1x32xf32>
    %cst_102 = arith.constant dense<0.000000e+00> : vector<1x96xf32>
    %326 = tpu.matmul %317, %318, %cst_102 {dimension_numbers = #tpu.dot_dimension_numbers<[1], [0], [0], [1], [0, 0, 1, 1], [], []>} : vector<1x32xf32>, vector<32x96xf32>, vector<1x96xf32> -> vector<1x96xf32>
    %327 = arith.addf %326, %320 : vector<1x96xf32>
    %328 = vector.extract_strided_slice %327 {offsets = [0, 0], sizes = [1, 32], strides = [1, 1]} : vector<1x96xf32> to vector<1x32xf32>
    %329 = vector.extract_strided_slice %327 {offsets = [0, 64], sizes = [1, 32], strides = [1, 1]} : vector<1x96xf32> to vector<1x32xf32>
    %330 = arith.addf %328, %329 : vector<1x32xf32>
    %cst_103 = arith.constant dense<0.000000e+00> : vector<1xf32>
    %331 = vector.multi_reduction <add>, %330, %cst_103 [1] : vector<1x32xf32> to vector<1xf32>
    %332 = vector.shape_cast %331 : vector<1xf32> to vector<1x1xf32>
    %cst_104 = arith.constant 3.125000e-02 : f32
    %333 = vector.broadcast %cst_104 : f32 to vector<1x1xf32>
    %334 = arith.mulf %332, %333 : vector<1x1xf32>
    %335 = arith.mulf %330, %330 : vector<1x32xf32>
    %cst_105 = arith.constant dense<0.000000e+00> : vector<1xf32>
    %336 = vector.multi_reduction <add>, %335, %cst_105 [1] : vector<1x32xf32> to vector<1xf32>
    %337 = vector.shape_cast %336 : vector<1xf32> to vector<1x1xf32>
    %cst_106 = arith.constant 3.125000e-02 : f32
    %338 = vector.broadcast %cst_106 : f32 to vector<1x1xf32>
    %339 = arith.mulf %337, %338 : vector<1x1xf32>
    %340 = arith.mulf %334, %334 : vector<1x1xf32>
    %341 = arith.subf %339, %340 : vector<1x1xf32>
    %342 = vector.broadcast %334 : vector<1x1xf32> to vector<1x32xf32>
    %343 = arith.subf %330, %342 : vector<1x32xf32>
    %cst_107 = arith.constant 9.99999974E-6 : f32
    %344 = vector.broadcast %cst_107 : f32 to vector<1x1xf32>
    %345 = arith.addf %341, %344 : vector<1x1xf32>
    %346 = math.rsqrt %345 : vector<1x1xf32>
    %347 = vector.broadcast %346 : vector<1x1xf32> to vector<1x32xf32>
    %348 = arith.mulf %343, %347 : vector<1x32xf32>
    %349 = arith.mulf %348, %322 : vector<1x32xf32>
    %350 = arith.addf %349, %323 : vector<1x32xf32>
    %cst_108 = arith.constant dense<0.000000e+00> : vector<1x32xf32>
    %351 = tpu.matmul %350, %319, %cst_108 {dimension_numbers = #tpu.dot_dimension_numbers<[1], [0], [0], [1], [0, 0, 1, 1], [], []>} : vector<1x32xf32>, vector<32x32xf32>, vector<1x32xf32> -> vector<1x32xf32>
    %352 = arith.addf %351, %321 : vector<1x32xf32>
    %cst_109 = arith.constant 0.000000e+00 : f32
    %353 = vector.broadcast %cst_109 : f32 to vector<1x32xf32>
    %354 = arith.maximumf %352, %353 : vector<1x32xf32>
    %355 = arith.addf %350, %354 : vector<1x32xf32>
    %cst_110 = arith.constant dense<0.000000e+00> : vector<1xf32>
    %356 = vector.multi_reduction <add>, %355, %cst_110 [1] : vector<1x32xf32> to vector<1xf32>
    %357 = vector.shape_cast %356 : vector<1xf32> to vector<1x1xf32>
    %cst_111 = arith.constant 3.125000e-02 : f32
    %358 = vector.broadcast %cst_111 : f32 to vector<1x1xf32>
    %359 = arith.mulf %357, %358 : vector<1x1xf32>
    %360 = arith.mulf %355, %355 : vector<1x32xf32>
    %cst_112 = arith.constant dense<0.000000e+00> : vector<1xf32>
    %361 = vector.multi_reduction <add>, %360, %cst_112 [1] : vector<1x32xf32> to vector<1xf32>
    %362 = vector.shape_cast %361 : vector<1xf32> to vector<1x1xf32>
    %cst_113 = arith.constant 3.125000e-02 : f32
    %363 = vector.broadcast %cst_113 : f32 to vector<1x1xf32>
    %364 = arith.mulf %362, %363 : vector<1x1xf32>
    %365 = arith.mulf %359, %359 : vector<1x1xf32>
    %366 = arith.subf %364, %365 : vector<1x1xf32>
    %367 = vector.broadcast %359 : vector<1x1xf32> to vector<1x32xf32>
    %368 = arith.subf %355, %367 : vector<1x32xf32>
    %cst_114 = arith.constant 9.99999974E-6 : f32
    %369 = vector.broadcast %cst_114 : f32 to vector<1x1xf32>
    %370 = arith.addf %366, %369 : vector<1x1xf32>
    %371 = math.rsqrt %370 : vector<1x1xf32>
    %372 = vector.broadcast %371 : vector<1x1xf32> to vector<1x32xf32>
    %373 = arith.mulf %368, %372 : vector<1x32xf32>
    %374 = arith.mulf %373, %324 : vector<1x32xf32>
    %375 = arith.addf %374, %325 : vector<1x32xf32>
    %c0_115 = arith.constant 0 : index
    %c0_116 = arith.constant 0 : index
    %376 = vector.load %arg3[%c0_115, %c0_116] : memref<40x12xf32, #tpu.memory_space<vmem>>, vector<32x12xf32>
    %c32 = arith.constant 32 : index
    %c0_117 = arith.constant 0 : index
    %377 = vector.load %arg3[%c32, %c0_117] : memref<40x12xf32, #tpu.memory_space<vmem>>, vector<1x12xf32>
    %cst_118 = arith.constant dense<0.000000e+00> : vector<1x12xf32>
    %378 = tpu.matmul %375, %376, %cst_118 {dimension_numbers = #tpu.dot_dimension_numbers<[1], [0], [0], [1], [0, 0, 1, 1], [], []>} : vector<1x32xf32>, vector<32x12xf32>, vector<1x12xf32> -> vector<1x12xf32>
    %379 = arith.addf %378, %377 : vector<1x12xf32>
    %c0_119 = arith.constant 0 : index
    %c0_120 = arith.constant 0 : index
    %c0_121 = arith.constant 0 : index
    %380 = vector.load %arg4[%c0_119, %c0_120, %c0_121] : memref<1x1x12xf32, #tpu.memory_space<vmem>>, vector<1x1x12xf32>
    %381 = vector.shape_cast %380 : vector<1x1x12xf32> to vector<1x12xf32>
    %382 = vector.shape_cast %379 : vector<1x12xf32> to vector<1x1x12xf32>
    tpu.vector_store %arg4[%c0_119, %c0_120, %c0_121], %382 {strides = array<i32>} : memref<1x1x12xf32, #tpu.memory_space<vmem>>, vector<1x1x12xf32>,
    return
  }
  func.func @transform_0(%arg0: i32) -> (i32, i32, i32) {
    %c0_i32 = arith.constant 0 : i32
    %c0_i32_0 = arith.constant 0 : i32
    %c0_i32_1 = arith.constant 0 : i32
    return %arg0, %c0_i32, %c0_i32_0 : i32, i32, i32
  }
  func.func @transform_1(%arg0: i32) -> (i32, i32) {
    %c0_i32 = arith.constant 0 : i32
    %c0_i32_0 = arith.constant 0 : i32
    %c0_i32_1 = arith.constant 0 : i32
    return %c0_i32, %c0_i32_0 : i32, i32
  }
  func.func @transform_2(%arg0: i32) -> (i32, i32) {
    %c0_i32 = arith.constant 0 : i32
    %c0_i32_0 = arith.constant 0 : i32
    %c0_i32_1 = arith.constant 0 : i32
    return %c0_i32, %c0_i32_0 : i32, i32
  }
  func.func @transform_3(%arg0: i32) -> (i32, i32, i32) {
    %c0_i32 = arith.constant 0 : i32
    %c0_i32_0 = arith.constant 0 : i32
    %c0_i32_1 = arith.constant 0 : i32
    return %arg0, %c0_i32, %c0_i32_0 : i32, i32, i32
  }
}

</mosaic_0001>

<bundles_post_ra>
// kernel: deepset_attention_forward.1
= control target key start
LH: loop header
LB: loop body
LE: loop exit
PB: predicated region body
PF: predicated region fallthrough
CT: control target
= control target key end

     0   :  { %s1351_s12 = smov 0   ;;  %s1635_s0 = inlined_call_operand.vmem [shape: f32[2,8,4], index: 0, kind: input, shape index: {}]   ;;  %s1636_s1 = inlined_call_operand.vmem [shape: f32[192,96], index: 1, kind: input, shape index: {}]   ;;  %s1637_s2 = inlined_call_operand.vmem [shape: f32[40,12], index: 2, kind: input, shape index: {}]   ;;  %s1638_s3 = inlined_call_operand.vmem [shape: f32[2,1,12], index: 3, kind: output, shape index: {}]  }
   0x1 LB: > { %s1191_s13 = sadd.s32 4294967295, %s1315_s12   ;;  %p1195_p0 = scmp.ge.s32.totalorder %s1315_s12, 1  ;;  %s1315_s12 = sphi %s1351_s12, %s13_s12  }
   0x2   : > { %p136_p1 = scmp.lt.s32.totalorder %s1315_s12, 3 }
   0x4   : > { %p137_p2 = pnand %p1195_p0, %p136_p1 }
   0x5   : > { %p157_p3 = scmp.lt.s32.totalorder (!%p137_p2), %s1191_s13, 1  ;;  %s1317_s22 = smov (!%p137_p2), 64  }
   0x6   : > { %140 = sbr.rel (%p137_p2) target bundleno = 3891 (0xf33), region = 32  ;;  %s1318_s23 = smov (!%p137_p2), 88  }
   0x7   : > { %s1319_s24 = smov (!%p137_p2), 96   ;;  %s1320_s25 = smov (!%p137_p2), 120  }
   0x8   : > { %s1321_s26 = smov (!%p137_p2), 80   ;;  %s1322_s27 = smov (!%p137_p2), 72  }
   0x9   : > { %s1323_s28 = smov (!%p137_p2), 112   ;;  %s1324_s29 = smov (!%p137_p2), 56  }
   0xa   : > { %s1325_s30 = smov (!%p137_p2), 104   ;;  %s1326_s4 = smov (!%p137_p2), 40  }
   0xb   : > { %v165_v0 = vld [vmem:[%s1636_s1] sm:$0xf]  ;;  %vm181_vm0 = vcmask 1043456   ;;  %s1640_s13 = smov (!%p157_p3, %s1191_s13), 1  ;;  %vm177_vm1 = vcmask 31744   ;;  %vm208_vm2 = vcmask 64512  }
   0xc   : > { %1197 = vmatpush.msk.msra.mxu0 %vm181_vm0, %v165_v0  ;;  %s1196_s16 = sshll.u32 %s1640_s13, 3  ;;  %v1253_v2 = vld [vmem:[%s1636_s1 + $0x28] ss:$0 sm:$0xff]  ;;  %s1327_s5 = smov 48   ;;  %vm342_vm3 = vcmask 130112   ;;  %vm414_vm4 = vcmask 195712  }
   0xd   : > { %s160_s19 = scalar_lea.vmem %s1635_s0, %s1196_s16  ;;  %s1328_s6 = smov 8   ;;  %vm486_vm5 = vcmask 261312   ;;  %vm489_vm6 = vcmask 261120  }
   0xe   : > { %v164_v1 = vld [vmem:[%s160_s19] sm:$0xff]  ;;  %s1329_s7 = smov 24   ;;  %s1330_s8 = smov 16  }
   0xf   : > { %1198 = vmatmul.msk.f32.vlgmr.msra.gmra.mxu0 %vm177_vm1, %v164_v1 }
  0x8c   : > { %v202_v3 = vpop.f32.mrf.mxu0 }
  0x8d   : > { %v1371_v4 = vadd.f32 %v1253_v2, %v202_v3 }
  0x8f   : > { %244 = vrot.lane.b32.xlu2 %v1371_v4, %s1317_s22  ;;  %274 = vrot.lane.b32.xlu1 %v1371_v4, %s1318_s23 }
  0x90   : > { %206 = vrot.lane.b32.xlu0 %v1371_v4, %s1319_s24 }
  0x97   : > { %272 = vrot.lane.b32.xlu2 %v1371_v4, %s1320_s25 }
  0x9f   : > { %346 = vrot.lane.b32.xlu2 %v1371_v4, %s1321_s26 }
  0xa7   : > { %418 = vrot.lane.b32.xlu2 %v1371_v4, %s1322_s27 }
  0xaf   : > { %344 = vrot.lane.b32.xlu2 %v1371_v4, %s1323_s28 }
  0xe9   : > { %v245_v5 = vpop.permute.xlu2 %244 }
  0xea   : > { %265 = vmatpush.msra.mxu2 %v245_v5 }
  0xf1   : > { %v273_v6 = vpop.permute.xlu2 %272 }
  0xf9   : > { %v347_v7 = vpop.permute.xlu2 %346 }
  0xfa   : > { %1205 = vmatpush.xpose.msk.msrb.mxu2 %vm208_vm2, %v347_v7 }
 0x101   : > { %v419_v8 = vpop.permute.xlu2 %418  ;;  %v275_v9 = vpop.permute.xlu1 %274 }
 0x102   : > { %v207_v10 = vpop.permute.xlu0 %206  ;;  %1202 = vmatpush.xpose.msk.msra.mxu3 %vm208_vm2, %v275_v9  ;;  %v167_v9 = vld [vmem:[%s1636_s1 + $0x10] sm:$0xff] }
 0x103   : > { %1199 = vmatpush.xpose.msk.msra.mxu1 %vm208_vm2, %v207_v10  ;;  %v166_v10 = vld [vmem:[%s1636_s1 + $0x8] sm:$0xff] }
 0x105   : > { %1203 = vmatmul.msk.f32.vlgmr.msra.gmra.mxu3 %vm208_vm2, %v273_v6 }
 0x106   : > { %1208 = vmatpush.xpose.msk.msrb.mxu3 %vm208_vm2, %v419_v8  ;;  %1200 = vmatmul.msk.f32.vlgmr.msra.gmra.mxu1 %vm208_vm2, %v1371_v4  ;;  %v169_v8 = vld [vmem:[%s1636_s1 + $0x20] sm:$0xff] }
 0x109   : > { %v345_v15 = vpop.permute.xlu2 %344 }
 0x183   : > { %v230_v11 = vpop.f32.mrf.mxu1 }
 0x184   : > { %v233_v12 = vsel %vm208_vm2, %v230_v11, -inf }
 0x185   : > { %234 = vmax.xlane.f32.xlu0 %v233_v12 }
 0x188   : > { %v297_v13 = vpop.f32.mrf.mxu3 }
 0x189   : > { %v300_v14 = vsel %vm208_vm2, %v297_v13, -inf }
 0x18a   : > { %301 = vmax.xlane.f32.xlu2 %v300_v14 }
 0x1a2   : > { %311 = vrot.lane.b32.xlu2 %v1371_v4, %s1324_s29 }
 0x1f8   : > { %v235_v16 = vpop.xlane.xlu0 %234 }
 0x1f9   : > { %v236_v17 = vsub.f32 %v230_v11, %v235_v16 }
 0x1fb   : > { %v237_v18 = vmul.f32 1.442695, %v236_v17 }
 0x1fd   : > { %1265 = vpow2.f32 %v237_v18  ;;  %v302_v19 = vpop.xlane.xlu2 %301 }
 0x1fe   : > { %v303_v29 = vsub.f32 %v297_v13, %v302_v19 }
 0x200   : > { %v304_v32 = vmul.f32 1.442695, %v303_v29 }
 0x203   : > { %v1266_v20 = vpop.eup %1265 }
 0x204   : > { %v239_v21 = vsel %vm208_vm2, %v1266_v20, 0.0 }
 0x205   : > { %240 = vadd.xlane.f32.xlu1 %v239_v21  ;;  %v312_v22 = vpop.permute.xlu2 %311 }
 0x206   : > { %332 = vmatpush.msrb.mxu0 %v312_v22 }
 0x21e   : > { %416 = vrot.lane.b32.xlu1 %v1371_v4, %s1325_s30 }
 0x278   : > { %v241_v23 = vpop.xlane.xlu1 %240 }
 0x279   : > { %1267 = vrcp.f32 %v241_v23 }
 0x27a   : > { %1269 = vpow2.f32 %v304_v32 }
 0x27f   : > { %v1268_v24 = vpop.eup %1267 }
 0x280   : > { %v243_v25 = vmul.f32 %v1268_v24, %v1266_v20  ;;  %v1270_v35 = vpop.eup %1269 }
 0x281   : > { %v306_v36 = vsel %vm208_vm2, %v1270_v35, 0.0 }
 0x282   : > { %1201 = vmatmul.msk.f32.vlgmr.msra.gmra.mxu2 %vm208_vm2, %v243_v25  ;;  %v1254_v25 = vld [vmem:[%s1636_s1 + $0x2a] ss:$0 sm:$0xff] }
 0x283   : > { %534 = vmatpush.msra.mxu2 %v169_v8 }
 0x28a   : > { %1206 = vmatmul.msk.f32.vlgmr.msrb.gmra.mxu2 %vm208_vm2, %v345_v15 }
 0x290   : > { %v417_v26 = vpop.permute.xlu1 %416 }
 0x291   : > { %1209 = vmatmul.msk.f32.vlgmr.msrb.gmra.mxu3 %vm208_vm2, %v417_v26 }
 0x305   : > { %v267_v27 = vpop.f32.mrf.mxu2 }
 0x306   : > { %v270_v28 = vadd.f32 %v267_v27, %v1371_v4 }
 0x308   : > { %271 = vst.msk [vmem:[#allocation2] sm:$0xff] %vm208_vm2, %v270_v28  ;;  %v1255_v28 = vld [vmem:[%s1636_s1 + $0x2b] ss:$0 sm:$0xff] }
 0x30d   : > { %v369_v30 = vpop.f32.mrf.mxu2 }
 0x30e   : > { %v372_v31 = vsel %vm208_vm2, %v369_v30, -inf }
 0x30f   : > { %373 = vmax.xlane.f32.xlu1 %v372_v31  ;;  %v1256_v31 = vld [vmem:[%s1636_s1 + $0x29] ss:$0 sm:$0xff] }
 0x314   : > { %v441_v33 = vpop.f32.mrf.mxu3 }
 0x315   : > { %v444_v34 = vsel %vm208_vm2, %v441_v33, -inf }
 0x316   : > { %445 = vmax.xlane.f32.xlu0 %v444_v34 }
 0x31e   : > { %307 = vadd.xlane.f32.xlu0 %v306_v36 }
 0x328   : > { %455 = vrot.lane.b32.xlu1 %v1371_v4, %s1326_s4 }
 0x382   : > { %v374_v37 = vpop.xlane.xlu1 %373 }
 0x383   : > { %v375_v40 = vsub.f32 %v369_v30, %v374_v37 }
 0x385   : > { %v376_v42 = vmul.f32 1.442695, %v375_v40  ;;  %v574_v40 = vld [vmem:[%s1636_s1 + $0x40] sm:$0xff] }
 0x389   : > { %v446_v38 = vpop.xlane.xlu0 %445 }
 0x38a   : > { %v447_v39 = vsub.f32 %v441_v33, %v446_v38 }
 0x38c   : > { %v448_v41 = vmul.f32 1.442695, %v447_v39  ;;  %v575_v39 = vld [vmem:[%s1636_s1 + $0x48] sm:$0xff] }
 0x38e   : > { %1271 = vpow2.f32 %v448_v41  ;;  %v573_v41 = vld [vmem:[%s1636_s1 + $0x38] sm:$0xff] }
 0x391   : > { %v308_v43 = vpop.xlane.xlu0 %307 }
 0x392   : > { %1273 = vrcp.f32 %v308_v43 }
 0x393   : > { %1275 = vpow2.f32 %v376_v42  ;;  %v572_v42 = vld [vmem:[%s1636_s1 + $0x30] sm:$0xff] }
 0x394   : > { %v1272_v44 = vpop.eup %1271 }
 0x395   : > { %v450_v45 = vsel %vm208_vm2, %v1272_v44, 0.0 }
 0x396   : > { %451 = vadd.xlane.f32.xlu0 %v450_v45 }
 0x398   : > { %v1274_v46 = vpop.eup %1273 }
 0x399   : > { %v310_v47 = vmul.f32 %v1274_v46, %v1270_v35  ;;  %v1276_v48 = vpop.eup %1275 }
 0x39a   : > { %v456_v49 = vpop.permute.xlu1 %455  ;;  %v378_v50 = vsel %vm208_vm2, %v1276_v48, 0.0 }
 0x39b   : > { %1204 = vmatmul.msk.f32.vlgmr.msrb.gmra.mxu0 %vm208_vm2, %v310_v47 }
 0x39c   : > { %476 = vmatpush.msra.mxu0 %v456_v49 }
 0x39e   : > { %379 = vadd.xlane.f32.xlu0 %v378_v50 }
 0x3b2   : > { %383 = vrot.lane.b32.xlu0 %v1371_v4, %s1327_s5 }
 0x409   : > { %v452_v51 = vpop.xlane.xlu0 %451 }
 0x40a   : > { %1277 = vrcp.f32 %v452_v51 }
 0x410   : > { %v1278_v52 = vpop.eup %1277 }
 0x411   : > { %v454_v53 = vmul.f32 %v1278_v52, %v1272_v44  ;;  %v380_v54 = vpop.xlane.xlu0 %379 }
 0x412   : > { %1279 = vrcp.f32 %v380_v54 }
 0x413   : > { %1210 = vmatmul.msk.f32.vlgmr.msra.gmra.mxu0 %vm208_vm2, %v454_v53 }
 0x418   : > { %v334_v55 = vpop.f32.mrf.mxu0  ;;  %v1280_v56 = vpop.eup %1279 }
 0x419   : > { %338 = vrot.lane.b32.xlu0 %v334_v55, %s1328_s6  ;;  %v382_v58 = vmul.f32 %v1280_v56, %v1276_v48 }
 0x424   : > { %v384_v57 = vpop.permute.xlu0 %383 }
 0x425   : > { %404 = vmatpush.msrb.mxu1 %v384_v57  ;;  %v1257_v57 = vld [vmem:[%s1636_s1 + $0x2c] ss:$0 sm:$0xff] }
 0x426   : > { %1207 = vmatmul.msk.f32.vlgmr.msrb.gmra.mxu1 %vm208_vm2, %v382_v58 }
 0x427   : > { %602 = vmatpush.msra.mxu1 %v575_v39 }
 0x429   : > { %603 = vmatpush.msra.mxu1 %v574_v40 }
 0x42b   : > { %604 = vmatpush.msra.mxu1 %v573_v41 }
 0x42d   : > { %605 = vmatpush.msra.mxu1 %v572_v42 }
 0x48b   : > { %v339_v59 = vpop.permute.xlu0 %338 }
 0x48c   : > { %v341_v60 = vadd.f32 %v339_v59, %v1371_v4 }
 0x48e   : > { %343 = vst.msk [vmem:[#allocation2] sm:$0xff] %vm342_vm3, %v341_v60  ;;  %v1258_v60 = vld [vmem:[%s1636_s1 + $0x2d] ss:$0 sm:$0xff] }
 0x490   : > { %v478_v61 = vpop.f32.mrf.mxu0 }
 0x491   : > { %482 = vrot.lane.b32.xlu1 %v478_v61, %s1329_s7 }
 0x4a3   : > { %v406_v62 = vpop.f32.mrf.mxu1 }
 0x4a4   : > { %410 = vrot.lane.b32.xlu2 %v406_v62, %s1330_s8 }
 0x4fe   : > { %v411_v63 = vpop.permute.xlu2 %410 }
 0x4ff   : > { %v413_v0 = vadd.f32 %v411_v63, %v1371_v4  ;;  %v1259_v63 = vld [vmem:[%s1636_s1 + $0x70] ss:$0 sm:$0xff] }
 0x501   : > { %415 = vst.msk [vmem:[#allocation2] sm:$0xff] %vm414_vm4, %v413_v0 }
 0x503   : > { %v483_v1 = vpop.permute.xlu1 %482 }
 0x504   : > { %v485_v2 = vadd.f32 %v483_v1, %v1371_v4  ;;  %v168_v4 = vld [vmem:[%s1636_s1 + $0x18] sm:$0xff] }
 0x505   : > { %535 = vmatpush.msra.mxu2 %v168_v4 }
 0x506   : > { %487 = vst.msk [vmem:[#allocation2] sm:$0xff] %vm486_vm5, %v485_v2 }
 0x507   : > { %536 = vmatpush.msra.mxu2 %v167_v9 }
 0x509   : > { %537 = vmatpush.msra.mxu2 %v166_v10 }
 0x50d   : > { %v488_v3 = vld [vmem:[#allocation2] sm:$0xff] }
 0x50e   : > { %v490_v5 = vsel %vm489_vm6, %v488_v3, 0.0  ;;  %v494_v6 = vmul.f32 %v488_v3, %v488_v3 }
 0x50f   : > { %491 = vadd.xlane.f32.xlu0 %v490_v5 }
 0x510   : > { %v495_v7 = vsel %vm489_vm6, %v494_v6, 0.0 }
 0x511   : > { %496 = vadd.xlane.f32.xlu2 %v495_v7 }
 0x582   : > { %v492_v11 = vpop.xlane.xlu0 %491 }
 0x583   : > { %v493_v12 = vmul.f32 0.03125, %v492_v11 }
 0x584   : > { %v497_v13 = vpop.xlane.xlu2 %496 }
 0x585   : > { %v499_v14 = vmul.f32 %v493_v12, %v493_v12  ;;  %v498_v15 = vmul.f32 0.03125, %v497_v13  ;;  %v501_v24 = vsub.f32 %v488_v3, %v493_v12 }
 0x587   : > { %v500_v16 = vsub.f32 %v498_v15, %v499_v14 }
 0x589   : > { %v502_v17 = vadd.f32 1e-05, %v500_v16 }
 0x58b   : > { %1281 = vrsqrt.f32 %v502_v17  ;;  %vm509_vm8 = vweird.f32 %v502_v17 }
 0x591   : > { %v1282_v18 = vpop.eup %1281 }
 0x592   : > { %v504_v19 = vmul.f32 %v1282_v18, %v502_v17  ;;  %vm510_vm7 = vweird.f32 %v1282_v18 }
 0x593   : > { %vm511_vm9 = vmor %vm509_vm8, %vm510_vm7 }
 0x594   : > { %v505_v20 = vmul.f32 %v1282_v18, %v504_v19 }
 0x596   : > { %v506_v21 = vmul.f32 0.5, %v505_v20 }
 0x598   : > { %v507_v22 = vsub.f32 1.5, %v506_v21 }
 0x59a   : > { %v508_v23 = vmul.f32 %v1282_v18, %v507_v22 }
 0x59c   : > { %v512_v26 = vsel %vm511_vm9, %v1282_v18, %v508_v23 }
 0x59d   : > { %v513_v27 = vmul.f32 %v512_v26, %v501_v24 }
 0x59f   : > { %v515_v29 = vmul.f32 %v1254_v25, %v513_v27 }
 0x5a1   : > { %v517_v30 = vadd.f32 %v1255_v28, %v515_v29 }
 0x5a3   : > { %1211 = vmatmul.msk.f32.vlgmr.msra.gmra.mxu2 %vm489_vm6, %v517_v30 }
 0x626   : > { %v539_v32 = vpop.f32.mrf.mxu2 }
 0x627   : > { %v540_v33 = vadd.f32 %v1256_v31, %v539_v32 }
 0x629   : > { %v542_v34 = vmax.f32 %v540_v33, 0.0 }
 0x62b   : > { %v543_v35 = vadd.f32 %v542_v34, %v517_v30 }
 0x62d   : > { %v544_v36 = vsel %vm489_vm6, %v543_v35, 0.0  ;;  %v548_v37 = vmul.f32 %v543_v35, %v543_v35 }
 0x62e   : > { %545 = vadd.xlane.f32.xlu1 %v544_v36 }
 0x62f   : > { %v549_v38 = vsel %vm489_vm6, %v548_v37, 0.0 }
 0x630   : > { %550 = vadd.xlane.f32.xlu0 %v549_v38 }
 0x6a1   : > { %v546_v43 = vpop.xlane.xlu1 %545 }
 0x6a2   : > { %v547_v44 = vmul.f32 0.03125, %v546_v43 }
 0x6a3   : > { %v551_v45 = vpop.xlane.xlu0 %550 }
 0x6a4   : > { %v553_v46 = vmul.f32 %v547_v44, %v547_v44  ;;  %v552_v47 = vmul.f32 0.03125, %v551_v45  ;;  %v555_v56 = vsub.f32 %v543_v35, %v547_v44 }
 0x6a6   : > { %v554_v48 = vsub.f32 %v552_v47, %v553_v46 }
 0x6a8   : > { %v556_v49 = vadd.f32 1e-05, %v554_v48 }
 0x6aa   : > { %1283 = vrsqrt.f32 %v556_v49  ;;  %vm563_vm11 = vweird.f32 %v556_v49 }
 0x6b0   : > { %v1284_v50 = vpop.eup %1283 }
 0x6b1   : > { %v558_v51 = vmul.f32 %v1284_v50, %v556_v49  ;;  %vm564_vm10 = vweird.f32 %v1284_v50 }
 0x6b2   : > { %vm565_vm12 = vmor %vm563_vm11, %vm564_vm10  ;;  %vm1142_vm11 = vcmask 90112  }
 0x6b3   : > { %v559_v52 = vmul.f32 %v1284_v50, %v558_v51 }
 0x6b5   : > { %v560_v53 = vmul.f32 0.5, %v559_v52 }
 0x6b7   : > { %v561_v54 = vsub.f32 1.5, %v560_v53 }
 0x6b9   : > { %v562_v55 = vmul.f32 %v1284_v50, %v561_v54 }
 0x6bb   : > { %v566_v58 = vsel %vm565_vm12, %v1284_v50, %v562_v55 }
 0x6bc   : > { %v567_v59 = vmul.f32 %v566_v58, %v555_v56 }
 0x6be   : > { %v569_v61 = vmul.f32 %v1257_v57, %v567_v59 }
 0x6c0   : > { %v571_v62 = vadd.f32 %v1258_v60, %v569_v61 }
 0x6c2   : > { %1212 = vmatmul.msk.f32.vlgmr.msra.gmra.mxu1 %vm489_vm6, %v571_v62 }
 0x73f   : > { %v607_v0 = vpop.f32.mrf.mxu1 }
 0x740   : > { %v1475_v1 = vadd.f32 %v1259_v63, %v607_v0 }
 0x742   : > { %676 = vrot.lane.b32.xlu0 %v1475_v1, %s1320_s25  ;;  %678 = vrot.lane.b32.xlu1 %v1475_v1, %s1318_s23 }
 0x743   : > { %611 = vrot.lane.b32.xlu2 %v1475_v1, %s1319_s24 }
 0x74a   : > { %820 = vrot.lane.b32.xlu0 %v1475_v1, %s1322_s27  ;;  %747 = vrot.lane.b32.xlu1 %v1475_v1, %s1323_s28 }
 0x74b   : > { %749 = vrot.lane.b32.xlu2 %v1475_v1, %s1321_s26 }
 0x753   : > { %818 = vrot.lane.b32.xlu2 %v1475_v1, %s1325_s30 }
 0x79d   : > { %v612_v2 = vpop.permute.xlu2 %611 }
 0x79e   : > { %1213 = vmatpush.xpose.msk.msra.mxu3 %vm208_vm2, %v612_v2 }
 0x7a1   : > { %1214 = vmatmul.msk.f32.vlgmr.msra.gmra.mxu3 %vm208_vm2, %v1475_v1 }
 0x7a5   : > { %v750_v3 = vpop.permute.xlu2 %749 }
 0x7a6   : > { %1219 = vmatpush.xpose.msk.msrb.mxu3 %vm208_vm2, %v750_v3 }
 0x7ad   : > { %v819_v4 = vpop.permute.xlu2 %818 }
 0x7b4   : > { %v677_v5 = vpop.permute.xlu0 %676  ;;  %v679_v6 = vpop.permute.xlu1 %678 }
 0x7b5   : > { %1216 = vmatpush.xpose.msk.msrb.mxu2 %vm208_vm2, %v679_v6  ;;  %v579_v6 = vld [vmem:[%s1636_s1 + $0x68] sm:$0xff] }
 0x7b6   : > { %934 = vmatpush.msra.mxu3 %v579_v6 }
 0x7b8   : > { %1217 = vmatmul.msk.f32.vlgmr.msrb.gmra.mxu2 %vm208_vm2, %v677_v5 }
 0x7bc   : > { %v821_v7 = vpop.permute.xlu0 %820  ;;  %v748_v8 = vpop.permute.xlu1 %747 }
 0x7bd   : > { %1220 = vmatmul.msk.f32.vlgmr.msrb.gmra.mxu3 %vm208_vm2, %v748_v8  ;;  %1222 = vmatpush.xpose.msk.msra.mxu2 %vm208_vm2, %v821_v7  ;;  %v578_v7 = vld [vmem:[%s1636_s1 + $0x60] sm:$0xff]  ;;  %v576_v8 = vld [vmem:[%s1636_s1 + $0x50] sm:$0xff] }
 0x7be   : > { %935 = vmatpush.msra.mxu3 %v578_v7 }
 0x7c0   : > { %1223 = vmatmul.msk.f32.vlgmr.msra.gmra.mxu2 %vm208_vm2, %v819_v4 }
 0x824   : > { %v634_v9 = vpop.f32.mrf.mxu3 }
 0x825   : > { %v637_v10 = vsel %vm208_vm2, %v634_v9, -inf }
 0x826   : > { %638 = vmax.xlane.f32.xlu0 %v637_v10 }
 0x83b   : > { %v701_v11 = vpop.f32.mrf.mxu2 }
 0x83c   : > { %v704_v12 = vsel %vm208_vm2, %v701_v11, -inf }
 0x83d   : > { %705 = vmax.xlane.f32.xlu1 %v704_v12 }
 0x840   : > { %v772_v13 = vpop.f32.mrf.mxu3 }
 0x841   : > { %v775_v14 = vsel %vm208_vm2, %v772_v13, -inf }
 0x842   : > { %776 = vmax.xlane.f32.xlu2 %v775_v14 }
 0x843   : > { %v843_v15 = vpop.f32.mrf.mxu2 }
 0x844   : > { %v846_v16 = vsel %vm208_vm2, %v843_v15, -inf }
 0x845   : > { %847 = vmax.xlane.f32.xlu0 %v846_v16 }
 0x859   : > { %715 = vrot.lane.b32.xlu0 %v1475_v1, %s1324_s29 }
 0x899   : > { %v639_v17 = vpop.xlane.xlu0 %638 }
 0x89a   : > { %v640_v18 = vsub.f32 %v634_v9, %v639_v17 }
 0x89c   : > { %v641_v19 = vmul.f32 1.442695, %v640_v18 }
 0x89e   : > { %1285 = vpow2.f32 %v641_v19 }
 0x8a4   : > { %v1286_v20 = vpop.eup %1285 }
 0x8a5   : > { %v643_v21 = vsel %vm208_vm2, %v1286_v20, 0.0 }
 0x8a6   : > { %644 = vadd.xlane.f32.xlu1 %v643_v21 }
 0x8b0   : > { %v706_v22 = vpop.xlane.xlu1 %705 }
 0x8b1   : > { %v707_v23 = vsub.f32 %v701_v11, %v706_v22  ;;  %v1260_v22 = vld [vmem:[%s1636_s1 + $0x72] ss:$0 sm:$0xff] }
 0x8b3   : > { %v708_v24 = vmul.f32 1.442695, %v707_v23 }
 0x8b5   : > { %1287 = vpow2.f32 %v708_v24  ;;  %v777_v25 = vpop.xlane.xlu2 %776 }
 0x8b6   : > { %v778_v26 = vsub.f32 %v772_v13, %v777_v25  ;;  %v1261_v25 = vld [vmem:[%s1636_s1 + $0x73] ss:$0 sm:$0xff] }
 0x8b8   : > { %v779_v27 = vmul.f32 1.442695, %v778_v26  ;;  %v848_v28 = vpop.xlane.xlu0 %847 }
 0x8b9   : > { %v849_v29 = vsub.f32 %v843_v15, %v848_v28  ;;  %v1262_v28 = vld [vmem:[%s1636_s1 + $0x71] ss:$0 sm:$0xff] }
 0x8ba   : > { %1289 = vpow2.f32 %v779_v27 }
 0x8bb   : > { %v1288_v30 = vpop.eup %1287  ;;  %v850_v31 = vmul.f32 1.442695, %v849_v29 }
 0x8bc   : > { %v710_v32 = vsel %vm208_vm2, %v1288_v30, 0.0 }
 0x8bd   : > { %1291 = vpow2.f32 %v850_v31  ;;  %711 = vadd.xlane.f32.xlu2 %v710_v32 }
 0x8bf   : > { %648 = vrot.lane.b32.xlu1 %v1475_v1, %s1317_s22 }
 0x8c0   : > { %v1290_v33 = vpop.eup %1289 }
 0x8c1   : > { %v781_v34 = vsel %vm208_vm2, %v1290_v33, 0.0 }
 0x8c2   : > { %782 = vadd.xlane.f32.xlu0 %v781_v34 }
 0x8c3   : > { %v1292_v35 = vpop.eup %1291 }
 0x8c4   : > { %v852_v36 = vsel %vm208_vm2, %v1292_v35, 0.0 }
 0x8c5   : > { %853 = vadd.xlane.f32.xlu2 %v852_v36  ;;  %v997_v36 = vld [vmem:[%s1636_s1 + $0x90] sm:$0xff] }
 0x8cb   : > { %v716_v37 = vpop.permute.xlu0 %715 }
 0x8cc   : > { %736 = vmatpush.msrb.mxu1 %v716_v37  ;;  %v996_v37 = vld [vmem:[%s1636_s1 + $0x88] sm:$0xff] }
 0x8d6   : > { %857 = vrot.lane.b32.xlu0 %v1475_v1, %s1326_s4  ;;  %s163_s4 = scalar_lea.vmem %s1638_s3, %s1640_s13 }
 0x8dd   : > { %786 = vrot.lane.b32.xlu2 %v1475_v1, %s1327_s5 }
 0x919   : > { %v645_v38 = vpop.xlane.xlu1 %644 }
 0x91a   : > { %1293 = vrcp.f32 %v645_v38 }
 0x920   : > { %v1294_v39 = vpop.eup %1293 }
 0x921   : > { %v647_v41 = vmul.f32 %v1294_v39, %v1286_v20 }
 0x930   : > { %v712_v40 = vpop.xlane.xlu2 %711 }
 0x931   : > { %v649_v42 = vpop.permute.xlu1 %648  ;;  %1295 = vrcp.f32 %v712_v40  ;;  %v995_v40 = vld [vmem:[%s1636_s1 + $0x80] sm:$0xff] }
 0x932   : > { %669 = vmatpush.msrb.mxu0 %v649_v42 }
 0x933   : > { %1215 = vmatmul.msk.f32.vlgmr.msrb.gmra.mxu0 %vm208_vm2, %v647_v41 }
 0x935   : > { %v783_v43 = vpop.xlane.xlu0 %782 }
 0x936   : > { %1297 = vrcp.f32 %v783_v43 }
 0x937   : > { %v1296_v44 = vpop.eup %1295 }
 0x938   : > { %v714_v45 = vmul.f32 %v1296_v44, %v1288_v30  ;;  %v854_v46 = vpop.xlane.xlu2 %853  ;;  %v994_v44 = vld [vmem:[%s1636_s1 + $0x78] sm:$0xff] }
 0x939   : > { %1299 = vrcp.f32 %v854_v46 }
 0x93a   : > { %1218 = vmatmul.msk.f32.vlgmr.msrb.gmra.mxu1 %vm208_vm2, %v714_v45 }
 0x93c   : > { %v1298_v47 = vpop.eup %1297 }
 0x93d   : > { %v785_v48 = vmul.f32 %v1298_v47, %v1290_v33 }
 0x93f   : > { %v1300_v50 = vpop.eup %1299 }
 0x940   : > { %v787_v49 = vpop.permute.xlu2 %786  ;;  %v856_v51 = vmul.f32 %v1300_v50, %v1292_v35 }
 0x941   : > { %807 = vmatpush.msra.mxu0 %v787_v49 }
 0x942   : > { %1221 = vmatmul.msk.f32.vlgmr.msra.gmra.mxu0 %vm208_vm2, %v785_v48 }
 0x943   : > { %1023 = vmatpush.msrb.mxu0 %v997_v36  ;;  %v1004_v36 = vld [vmem:[%s1636_s1 + $0xba] sm:$0x1] }
 0x945   : > { %1024 = vmatpush.msrb.mxu0 %v996_v37 }
 0x947   : > { %1025 = vmatpush.msrb.mxu0 %v995_v40 }
 0x948   : > { %v858_v52 = vpop.permute.xlu0 %857 }
 0x949   : > { %878 = vmatpush.msra.mxu1 %v858_v52  ;;  %1026 = vmatpush.msrb.mxu0 %v994_v44 }
 0x94a   : > { %1224 = vmatmul.msk.f32.vlgmr.msra.gmra.mxu1 %vm208_vm2, %v856_v51 }
 0x9b0   : > { %v671_v53 = vpop.f32.mrf.mxu0 }
 0x9b1   : > { %v674_v54 = vadd.f32 %v671_v53, %v1475_v1 }
 0x9b3   : > { %675 = vst.msk [vmem:[#allocation2] sm:$0xff] %vm208_vm2, %v674_v54  ;;  %v1263_v54 = vld [vmem:[%s1636_s1 + $0x74] ss:$0 sm:$0xff] }
 0x9b7   : > { %v738_v55 = vpop.f32.mrf.mxu1 }
 0x9b8   : > { %742 = vrot.lane.b32.xlu1 %v738_v55, %s1328_s6 }
 0x9bf   : > { %v809_v56 = vpop.f32.mrf.mxu0 }
 0x9c0   : > { %813 = vrot.lane.b32.xlu0 %v809_v56, %s1330_s8  ;;  %v1264_v56 = vld [vmem:[%s1636_s1 + $0x75] ss:$0 sm:$0xff] }
 0x9c7   : > { %v880_v57 = vpop.f32.mrf.mxu1 }
 0x9c8   : > { %884 = vrot.lane.b32.xlu1 %v880_v57, %s1329_s7 }
 0xa2a   : > { %v743_v58 = vpop.permute.xlu1 %742 }
 0xa2b   : > { %v745_v59 = vadd.f32 %v743_v58, %v1475_v1 }
 0xa2d   : > { %746 = vst.msk [vmem:[#allocation2] sm:$0xff] %vm342_vm3, %v745_v59  ;;  %vm1036_vm3 = vcmask 253952  }
 0xa32   : > { %v814_v60 = vpop.permute.xlu0 %813 }
 0xa33   : > { %v816_v61 = vadd.f32 %v814_v60, %v1475_v1 }
 0xa35   : > { %817 = vst.msk [vmem:[#allocation2] sm:$0xff] %vm414_vm4, %v816_v61 }
 0xa3a   : > { %v885_v62 = vpop.permute.xlu1 %884 }
 0xa3b   : > { %v887_v63 = vadd.f32 %v885_v62, %v1475_v1  ;;  %v577_v1 = vld [vmem:[%s1636_s1 + $0x58] sm:$0xff] }
 0xa3c   : > { %936 = vmatpush.msra.mxu3 %v577_v1 }
 0xa3d   : > { %888 = vst.msk [vmem:[#allocation2] sm:$0xff] %vm486_vm5, %v887_v63 }
 0xa3e   : > { %937 = vmatpush.msra.mxu3 %v576_v8 }
 0xa44   : > { %v889_v0 = vld [vmem:[#allocation2] sm:$0xff] }
 0xa45   : > { %v890_v2 = vsel %vm489_vm6, %v889_v0, 0.0  ;;  %v894_v3 = vmul.f32 %v889_v0, %v889_v0 }
 0xa46   : > { %891 = vadd.xlane.f32.xlu2 %v890_v2 }
 0xa47   : > { %v895_v5 = vsel %vm489_vm6, %v894_v3, 0.0 }
 0xa48   : > { %896 = vadd.xlane.f32.xlu0 %v895_v5 }
 0xab9   : > { %v892_v4 = vpop.xlane.xlu2 %891 }
 0xaba   : > { %v893_v9 = vmul.f32 0.03125, %v892_v4 }
 0xabb   : > { %v897_v10 = vpop.xlane.xlu0 %896 }
 0xabc   : > { %v899_v11 = vmul.f32 %v893_v9, %v893_v9  ;;  %v898_v12 = vmul.f32 0.03125, %v897_v10  ;;  %v901_v21 = vsub.f32 %v889_v0, %v893_v9  ;;  %v1002_v10 = vld [vmem:[%s1636_s1 + $0xb8] sm:$0x1] }
 0xabe   : > { %v900_v13 = vsub.f32 %v898_v12, %v899_v11 }
 0xac0   : > { %v902_v14 = vadd.f32 1e-05, %v900_v13 }
 0xac2   : > { %1301 = vrsqrt.f32 %v902_v14  ;;  %vm909_vm14 = vweird.f32 %v902_v14 }
 0xac8   : > { %v1302_v15 = vpop.eup %1301 }
 0xac9   : > { %v904_v16 = vmul.f32 %v1302_v15, %v902_v14  ;;  %vm910_vm13 = vweird.f32 %v1302_v15 }
 0xaca   : > { %vm911_vm15 = vmor %vm909_vm14, %vm910_vm13 }
 0xacb   : > { %v905_v17 = vmul.f32 %v1302_v15, %v904_v16 }
 0xacd   : > { %v906_v18 = vmul.f32 0.5, %v905_v17 }
 0xacf   : > { %v907_v19 = vsub.f32 1.5, %v906_v18  ;;  %v1001_v18 = vld [vmem:[%s1636_s1 + $0xb0] sm:$0xff] }
 0xad0   : > { %1078 = vmatpush.msrb.mxu2 %v1001_v18 }
 0xad1   : > { %v908_v20 = vmul.f32 %v1302_v15, %v907_v19  ;;  %v1000_v19 = vld [vmem:[%s1636_s1 + $0xa8] sm:$0xff] }
 0xad2   : > { %1079 = vmatpush.msrb.mxu2 %v1000_v19 }
 0xad3   : > { %v912_v23 = vsel %vm911_vm15, %v1302_v15, %v908_v20  ;;  %v999_v20 = vld [vmem:[%s1636_s1 + $0xa0] sm:$0xff] }
 0xad4   : > { %v913_v24 = vmul.f32 %v912_v23, %v901_v21  ;;  %v998_v21 = vld [vmem:[%s1636_s1 + $0x98] sm:$0xff]  ;;  %1080 = vmatpush.msrb.mxu2 %v999_v20 }
 0xad6   : > { %v915_v26 = vmul.f32 %v1260_v22, %v913_v24  ;;  %1081 = vmatpush.msrb.mxu2 %v998_v21 }
 0xad8   : > { %v917_v27 = vadd.f32 %v1261_v25, %v915_v26 }
 0xada   : > { %1225 = vmatmul.msk.f32.vlgmr.msra.gmra.mxu3 %vm489_vm6, %v917_v27 }
 0xb5d   : > { %v939_v29 = vpop.f32.mrf.mxu3 }
 0xb5e   : > { %v940_v30 = vadd.f32 %v1262_v28, %v939_v29 }
 0xb60   : > { %v942_v31 = vmax.f32 %v940_v30, 0.0 }
 0xb62   : > { %v943_v32 = vadd.f32 %v942_v31, %v917_v27 }
 0xb64   : > { %v944_v33 = vsel %vm489_vm6, %v943_v32, 0.0  ;;  %v948_v34 = vmul.f32 %v943_v32, %v943_v32 }
 0xb65   : > { %945 = vadd.xlane.f32.xlu1 %v944_v33 }
 0xb66   : > { %v949_v35 = vsel %vm489_vm6, %v948_v34, 0.0 }
 0xb67   : > { %950 = vadd.xlane.f32.xlu2 %v949_v35 }
 0xbd8   : > { %v946_v38 = vpop.xlane.xlu1 %945 }
 0xbd9   : > { %v947_v39 = vmul.f32 0.03125, %v946_v38 }
 0xbda   : > { %v951_v41 = vpop.xlane.xlu2 %950 }
 0xbdb   : > { %v953_v42 = vmul.f32 %v947_v39, %v947_v39  ;;  %v952_v43 = vmul.f32 0.03125, %v951_v41  ;;  %v955_v53 = vsub.f32 %v943_v32, %v947_v39  ;;  %v1005_v39 = vld [vmem:[%s1636_s1 + $0xbb] sm:$0x1] }
 0xbdd   : > { %v954_v45 = vsub.f32 %v952_v43, %v953_v42  ;;  %v1003_v42 = vld [vmem:[%s1636_s1 + $0xb9] sm:$0x1] }
 0xbdf   : > { %v956_v46 = vadd.f32 1e-05, %v954_v45 }
 0xbe1   : > { %1303 = vrsqrt.f32 %v956_v46  ;;  %vm963_vm1 = vweird.f32 %v956_v46 }
 0xbe7   : > { %v1304_v47 = vpop.eup %1303 }
 0xbe8   : > { %v958_v48 = vmul.f32 %v1304_v47, %v956_v46  ;;  %vm964_vm0 = vweird.f32 %v1304_v47 }
 0xbe9   : > { %vm965_vm2 = vmor %vm963_vm1, %vm964_vm0 }
 0xbea   : > { %v959_v49 = vmul.f32 %v1304_v47, %v958_v48 }
 0xbec   : > { %v960_v50 = vmul.f32 0.5, %v959_v49 }
 0xbee   : > { %v961_v51 = vsub.f32 1.5, %v960_v50  ;;  %v1117_v50 = vld [vmem:[%s1637_s2 + $0x18] sm:$0xff] }
 0xbef   : > { %1134 = vmatpush.msrb.mxu1 %v1117_v50 }
 0xbf0   : > { %v962_v52 = vmul.f32 %v1304_v47, %v961_v51  ;;  %v1116_v51 = vld [vmem:[%s1637_s2 + $0x10] sm:$0xff] }
 0xbf1   : > { %1135 = vmatpush.msrb.mxu1 %v1116_v51 }
 0xbf2   : > { %v966_v55 = vsel %vm965_vm2, %v1304_v47, %v962_v52  ;;  %v1115_v52 = vld [vmem:[%s1637_s2 + $0x8] sm:$0xff] }
 0xbf3   : > { %v967_v57 = vmul.f32 %v966_v55, %v955_v53  ;;  %v1114_v53 = vld [vmem:[%s1637_s2] sm:$0xff]  ;;  %1136 = vmatpush.msrb.mxu1 %v1115_v52 }
 0xbf5   : > { %v969_v58 = vmul.f32 %v1263_v54, %v967_v57  ;;  %1137 = vmatpush.msrb.mxu1 %v1114_v53 }
 0xbf7   : > { %v971_v59 = vadd.f32 %v1264_v56, %v969_v58 }
 0xbf9   : > { %v973_v60 = vrot.slane %v971_v59, 1  ;;  %v976_v62 = vrot.slane %v971_v59, 2  ;;  %v979_v0 = vrot.slane %v971_v59, 3  ;;  %v982_v3 = vrot.slane %v971_v59, 4 }
 0xbfa   : > { %v985_v6 = vrot.slane %v971_v59, 5  ;;  %v988_v1 = vrot.slane %v971_v59, 6  ;;  %v991_v4 = vrot.slane %v971_v59, 7 }
 0xbfb   : > { %v975_v61 = vadd.f32 %v973_v60, %v971_v59 }
 0xbfd   : > { %v978_v63 = vadd.f32 %v976_v62, %v975_v61 }
 0xbff   : > { %v981_v2 = vadd.f32 %v979_v0, %v978_v63 }
 0xc01   : > { %v984_v5 = vadd.f32 %v982_v3, %v981_v2 }
 0xc03   : > { %v987_v7 = vadd.f32 %v985_v6, %v984_v5  ;;  %v1006_v6 = vld [vmem:[%s1636_s1 + $0xbc] sm:$0x1] }
 0xc05   : > { %v990_v8 = vadd.f32 %v988_v1, %v987_v7 }
 0xc07   : > { %v993_v9 = vadd.f32 %v991_v4, %v990_v8  ;;  %v1007_v8 = vld [vmem:[%s1636_s1 + $0xbd] sm:$0x1] }
 0xc09   : > { %1226 = vmatmul.msk.f32.vlgmr.msrb.gmra.mxu0 %vm489_vm6, %v993_v9 }
 0xc86   : > { %v1028_v11 = vpop.f32.mrf.mxu0 }
 0xc87   : > { %v1029_v12 = vadd.f32 %v1028_v11, %v1002_v10  ;;  %v1118_v10 = vld [vmem:[%s1637_s2 + $0x20] sm:$0x1] }
 0xc89   : > { %1032 = vrot.lane.b32.xlu0 %v1029_v12, %s1317_s22 }
 0xcfb   : > { %v1033_v13 = vpop.permute.xlu0 %1032 }
 0xcfc   : > { %v1035_v14 = vadd.f32 %v1033_v13, %v1029_v12 }
 0xcfe   : > { %v1037_v15 = vsel %vm1036_vm3, %v1035_v14, 0.0  ;;  %v1041_v16 = vmul.f32 %v1035_v14, %v1035_v14 }
 0xcff   : > { %1038 = vadd.xlane.f32.xlu1 %v1037_v15 }
 0xd00   : > { %v1042_v17 = vsel %vm1036_vm3, %v1041_v16, 0.0 }
 0xd01   : > { %1043 = vadd.xlane.f32.xlu2 %v1042_v17 }
 0xd72   : > { %v1039_v22 = vpop.xlane.xlu1 %1038 }
 0xd73   : > { %v1040_v23 = vmul.f32 0.03125, %v1039_v22 }
 0xd74   : > { %v1044_v24 = vpop.xlane.xlu2 %1043 }
 0xd75   : > { %v1046_v25 = vmul.f32 %v1040_v23, %v1040_v23  ;;  %v1045_v26 = vmul.f32 0.03125, %v1044_v24  ;;  %v1048_v35 = vsub.f32 %v1035_v14, %v1040_v23 }
 0xd77   : > { %v1047_v27 = vsub.f32 %v1045_v26, %v1046_v25 }
 0xd79   : > { %v1049_v28 = vadd.f32 1e-05, %v1047_v27 }
 0xd7b   : > { %1305 = vrsqrt.f32 %v1049_v28  ;;  %vm1056_vm5 = vweird.f32 %v1049_v28 }
 0xd81   : > { %v1306_v29 = vpop.eup %1305 }
 0xd82   : > { %v1051_v30 = vmul.f32 %v1306_v29, %v1049_v28  ;;  %vm1057_vm4 = vweird.f32 %v1306_v29 }
 0xd83   : > { %vm1058_vm7 = vmor %vm1056_vm5, %vm1057_vm4 }
 0xd84   : > { %v1052_v31 = vmul.f32 %v1306_v29, %v1051_v30 }
 0xd86   : > { %v1053_v32 = vmul.f32 0.5, %v1052_v31 }
 0xd88   : > { %v1054_v33 = vsub.f32 1.5, %v1053_v32 }
 0xd8a   : > { %v1055_v34 = vmul.f32 %v1306_v29, %v1054_v33 }
 0xd8c   : > { %v1059_v37 = vsel %vm1058_vm7, %v1306_v29, %v1055_v34 }
 0xd8d   : > { %v1060_v38 = vmul.f32 %v1059_v37, %v1048_v35 }
 0xd8f   : > { %v1061_v40 = vmul.f32 %v1060_v38, %v1004_v36 }
 0xd91   : > { %v1062_v41 = vadd.f32 %v1061_v40, %v1005_v39 }
 0xd93   : > { %1227 = vmatmul.msk.f32.vlgmr.msrb.gmra.mxu2 %vm489_vm6, %v1062_v41 }
 0xe16   : > { %v1083_v43 = vpop.f32.mrf.mxu2 }
 0xe17   : > { %v1084_v44 = vadd.f32 %v1083_v43, %v1003_v42 }
 0xe19   : > { %v1086_v45 = vmax.f32 %v1084_v44, 0.0 }
 0xe1b   : > { %v1087_v46 = vadd.f32 %v1086_v45, %v1062_v41 }
 0xe1d   : > { %v1088_v47 = vsel %vm1036_vm3, %v1087_v46, 0.0  ;;  %v1092_v48 = vmul.f32 %v1087_v46, %v1087_v46 }
 0xe1e   : > { %1089 = vadd.xlane.f32.xlu1 %v1088_v47 }
 0xe1f   : > { %v1093_v49 = vsel %vm1036_vm3, %v1092_v48, 0.0 }
 0xe20   : > { %1094 = vadd.xlane.f32.xlu2 %v1093_v49 }
 0xe91   : > { %v1090_v54 = vpop.xlane.xlu1 %1089 }
 0xe92   : > { %v1091_v55 = vmul.f32 0.03125, %v1090_v54 }
 0xe93   : > { %v1095_v56 = vpop.xlane.xlu2 %1094 }
 0xe94   : > { %v1097_v57 = vmul.f32 %v1091_v55, %v1091_v55  ;;  %v1096_v58 = vmul.f32 0.03125, %v1095_v56  ;;  %v1099_v5 = vsub.f32 %v1087_v46, %v1091_v55 }
 0xe96   : > { %v1098_v59 = vsub.f32 %v1096_v58, %v1097_v57 }
 0xe98   : > { %v1100_v60 = vadd.f32 1e-05, %v1098_v59 }
 0xe9a   : > { %1307 = vrsqrt.f32 %v1100_v60  ;;  %vm1107_vm9 = vweird.f32 %v1100_v60 }
 0xea0   : > { %v1308_v61 = vpop.eup %1307 }
 0xea1   : > { %v1102_v62 = vmul.f32 %v1308_v61, %v1100_v60  ;;  %vm1108_vm8 = vweird.f32 %v1308_v61 }
 0xea2   : > { %vm1109_vm10 = vmor %vm1107_vm9, %vm1108_vm8 }
 0xea3   : > { %v1103_v63 = vmul.f32 %v1308_v61, %v1102_v62 }
 0xea5   : > { %v1104_v0 = vmul.f32 0.5, %v1103_v63 }
 0xea7   : > { %v1105_v2 = vsub.f32 1.5, %v1104_v0 }
 0xea9   : > { %v1106_v3 = vmul.f32 %v1308_v61, %v1105_v2 }
 0xeab   : > { %v1110_v7 = vsel %vm1109_vm10, %v1308_v61, %v1106_v3 }
 0xeac   : > { %v1111_v1 = vmul.f32 %v1110_v7, %v1099_v5 }
 0xeae   : > { %v1112_v4 = vmul.f32 %v1111_v1, %v1006_v6 }
 0xeb0   : > { %v1113_v9 = vadd.f32 %v1112_v4, %v1007_v8 }
 0xeb2   : > { %1228 = vmatmul.msk.f32.vlgmr.msrb.gmra.mxu1 %vm489_vm6, %v1113_v9 }
 0xf2f   : > { %v1139_v11 = vpop.f32.mrf.mxu1 }
 0xf30   : > { %v1140_v12 = vadd.f32 %v1139_v11, %v1118_v10 }
 0xf32   : > { %1143 = vst.msk [vmem:[%s163_s4] sm:$0x1] %vm1142_vm11, %v1140_v12 }
 0xf33 PF: > { %s13_s12 = sadd.s32 1, %s1315_s12  }
 0xf34   : > { %p10_p4 = scmp.ge.s32.totalorder %s13_s12, 4  }
 0xf36   :  { %12 = sbr.rel (!%p10_p4) target bundleno = 1 (0x1), region = 62 }

</bundles_post_ra>
